<compile_context>
chip_gen: v7x
topology: tpu7x:2x2x1
jax: 0.10.0
libtpu: 0.0.40
codegen_flags: <defaults>
</compile_context>

<pallas_src>
import functools

import jax
import jax.numpy as jnp
from jax import lax
from jax.experimental import pallas as pl
from jax.experimental.pallas import tpu as pltpu


def _dyn_gat_kernel(x_ref, cp_ref, sa_ref, adp_ref, out_ref, *,
                    T, S, N, heads, block_b, adp_ratio, w_last, w_rest):
    sa_keep = sa_ref[...]                   # (N, N), pre-scaled by (1 - adp_ratio)
    adpvec = adp_ref[...]                   # (N, S)

    # Time weights built once per grid step on a tiny (1, T, 1, N) tile.
    t_iota = lax.broadcasted_iota(jnp.int32, (1, T, 1, N), 1)
    w_t = jnp.where(t_iota == T - 1, w_last, w_rest)             # f32

    # One-hot selector iota: only depends on s -> (1, 1, S, N).
    s_iota = lax.broadcasted_iota(jnp.int32, (1, 1, S, N), 2)

    K = heads * T * S

    # block_b is small & static; each per-b chain ends in its own output store.
    for b in range(block_b):
        x_b = x_ref[:, b]                   # (heads, T, S, N) f32
        cp_b = cp_ref[:, b]                 # (heads, T, N)    i32

        # Fold the time weights into x once; reused by both paths below.
        x_w = x_b * w_t                     # (heads, T, S, N)

        # ---- static-adjacency path: gather expressed as ONE MXU matmul -----
        # onehot[j,t,s,n] = (cp[j,t,n] == s); pure 0/1 (weights live in x_w).
        eq = s_iota == cp_b[:, :, None, :]                       # (heads,T,S,N)
        onehot = jnp.where(eq, 1.0, 0.0)
        # leading-dim merge only (S % 8 == 0 -> relayout-free reshape)
        attn_static = lax.dot_general(
            onehot.reshape(K, N), x_w.reshape(K, N),
            dimension_numbers=(((0,), (0,)), ((), ())),
            preferred_element_type=jnp.float32)                  # (N, N)

        acc = attn_static * sa_keep         # keep = (1 - adp_ratio) pre-folded

        # ---- adaptive attention path (softmax is nonlinear -> per head) ----
        attns = jnp.sum(x_w, axis=1)        # (heads, S, N) = per-head attns_sumT
        # Fuse the per-head adpvec matmuls into one wider MXU call.
        attns_cat = jnp.concatenate([attns[j] for j in range(heads)], axis=-1)
        logits = jnp.maximum(
            jnp.dot(adpvec, attns_cat, preferred_element_type=jnp.float32),
            0.0)                            # (N, heads*N)
        for j in range(heads):              # heads is small & static
            lj = logits[:, j * N:(j + 1) * N]                    # lane-aligned
            m = jnp.max(lj, axis=-1, keepdims=True)
            e = jnp.exp(lj - m)
            denom = jnp.sum(e, axis=-1, keepdims=True)
            # Exact reciprocal: (N, 1) denom, adp_ratio folded into the column.
            inv = pl.reciprocal(denom, approx=False) * adp_ratio
            acc = acc + e * inv

        out_ref[b] = acc                    # single lane-dense store per b


def _pick_block_b(B_out, max_block_b=8):
    """Largest divisor of B_out <= max_block_b that still leaves a grid of
    >= 2 steps, so a v7x chip can shard the grid across both TensorCores."""
    if B_out <= 1:
        return 1
    best = 1
    for bb in range(1, min(max_block_b, B_out) + 1):
        if B_out % bb == 0 and (B_out // bb) >= 2:
            best = bb
    return best


def dynamic_g_with_attention(attn_sample, cp, sa, adpvec, *, heads,
                             attn_ratio=0.5, adp_ratio=0.2, block_b=None):
    B, T, S, N = attn_sample.shape
    assert B % heads == 0, "batch must be divisible by heads"
    assert T >= 2, "T must be >= 2 (mean over attn[:, :-1])"
    # (heads, T, S, N) -> (heads*T*S, N) reshape in-kernel is only relayout-free
    # when S is a whole number of 8-row sublane tiles.
    assert S % 8 == 0, "S must be a multiple of 8 for the fused gather matmul"
    B_out = B // heads

    if block_b is None:
        block_b = _pick_block_b(B_out)
    assert B_out % block_b == 0, "block_b must divide B // heads"
    num_blocks = B_out // block_b

    # torch head-sum uses b = j * B_out + i  <=>  reshape batch to (heads, B_out)
    x_r = attn_sample.reshape(heads, B_out, T, S, N).astype(jnp.float32)
    cp_r = cp.reshape(heads, B_out, T, N).astype(jnp.int32)
    # Fold keep = (1 - adp_ratio) into the static adjacency once (loop invariant).
    sa_keep = (1.0 - adp_ratio) * sa.astype(jnp.float32)
    adpvec = adpvec.astype(jnp.float32)

    w_last = float(attn_ratio)
    w_rest = float(1.0 - attn_ratio) / float(T - 1)

    kernel = functools.partial(_dyn_gat_kernel, T=T, S=S, N=N, heads=heads,
                               block_b=block_b, adp_ratio=float(adp_ratio),
                               w_last=w_last, w_rest=w_rest)

    # VMEM budget: double-buffered blocks + in-kernel temporaries, with
    # headroom for v7x (64 MiB physical); allow up to ~100 MiB on v5e/v6e.
    block_in = (heads * block_b * T * S * N + heads * block_b * T * N
                + N * N + N * S) * 4
    block_out = block_b * N * N * 4
    temps = (3 * heads * T * S * N + (2 + 2 * heads) * N * N) * 4
    vmem_limit = int(min(100 * 2**20,
                         max(32 * 2**20, 2 * (block_in + block_out) + temps)))

    cost = pl.CostEstimate(
        flops=B_out * (2 * heads * T * S * N * N       # gather matmul
                       + 2 * S * N * heads * N         # fused adpvec matmul
                       + 6 * heads * T * S * N         # one-hot / x_w build
                       + 6 * heads * N * N),           # softmax + accumulate
        transcendentals=B_out * heads * N * N,         # exp
        bytes_accessed=((x_r.size + cp_r.size + sa_keep.size + adpvec.size) * 4
                        + B_out * N * N * 4))

    return pl.pallas_call(
        kernel,
        out_shape=jax.ShapeDtypeStruct((B_out, N, N), jnp.float32),
        grid_spec=pltpu.PrefetchScalarGridSpec(
            num_scalar_prefetch=0,
            grid=(num_blocks,),
            in_specs=[
                # all heads for `block_b` output batch elements per grid step
                pl.BlockSpec((heads, block_b, T, S, N),
                             lambda i: (0, i, 0, 0, 0)),
                pl.BlockSpec((heads, block_b, T, N), lambda i: (0, i, 0, 0)),
                # static adjacency (pre-scaled by 1 - adp_ratio), replicated
                pl.BlockSpec((N, N), lambda i: (0, 0)),
                # adaptive parameter vectors, replicated
                pl.BlockSpec((N, S), lambda i: (0, 0)),
            ],
            out_specs=pl.BlockSpec((block_b, N, N), lambda i: (i, 0, 0)),
        ),
        compiler_params=pltpu.CompilerParams(
            dimension_semantics=("parallel",),
            vmem_limit_bytes=vmem_limit),
        cost_estimate=cost,
    )(x_r, cp_r, sa_keep, adpvec)


def _ref_forward(attn_sample, cp, sa, adpvec, heads, attn_ratio, adp_ratio):
    """Pure-JAX reference of the torch forward (dyna_adj=None path)."""
    B, T, S, N = attn_sample.shape
    attn = attn_sample[jnp.arange(B)[:, None, None],
                       jnp.arange(T)[None, :, None],
                       cp, :]                                     # (B, T, N, N)
    attn_sumT = attn_ratio * attn[:, -1] + (1 - attn_ratio) * attn[:, :-1].mean(1)
    res = attn_sumT * sa[None]
    attns_sumT = (attn_ratio * attn_sample[:, -1]
                  + (1 - attn_ratio) * attn_sample[:, :-1].mean(1))
    logits = jax.nn.relu(jnp.einsum('ns,bsm->bnm', adpvec, attns_sumT))
    adp_a = jax.nn.softmax(logits, axis=-1)
    res = adp_ratio * adp_a + (1 - adp_ratio) * res
    return res.reshape(heads, B // heads, N, N).sum(0)


if __name__ == "__main__":
    key = jax.random.PRNGKey(0)
    k1, k2, k3 = jax.random.split(key, 3)

    # Module hyper-parameters (synthetic, deterministic)
    heads = 2
    attn_ratio, adp_ratio = 0.5, 0.2
    sample = 8
    S = sample + 2 * (sample // 2)     # adpvec second dim; must equal attn S dim
    B, T, N = 4, 4, 128                # N = num_nodes = static_adj.shape[0]

    # Inputs
    attn_sample = jax.random.normal(k1, (B, T, S, N), jnp.float32)
    cp = jax.random.randint(k2, (B, T, N, 1), 0, S, jnp.int32)   # torch cp shape

    # static_adj -> dense 0/1 adjacency (deterministic K-neighbor ring)
    Kn = 4
    static_adj = (jnp.arange(N)[:, None] + jnp.arange(1, Kn + 1)[None, :]) % N
    sa = jnp.zeros((N, N), jnp.float32).at[
        jnp.arange(N)[:, None], static_adj].set(1.0)

    # nn.Parameter(torch.randn(num_nodes, sample + 2*(sample//2)))
    adpvec = jax.random.normal(k3, (N, S), jnp.float32)

    out = dynamic_g_with_attention(attn_sample, cp[..., 0], sa, adpvec,
                                   heads=heads, attn_ratio=attn_ratio,
                                   adp_ratio=adp_ratio)
    out = jax.block_until_ready(out)

    ref = _ref_forward(attn_sample, cp[..., 0], sa, adpvec,
                       heads, attn_ratio, adp_ratio)

    assert out.shape == (B // heads, N, N), out.shape
    assert jnp.allclose(out, ref, rtol=1e-5, atol=1e-5), \
        float(jnp.max(jnp.abs(out - ref)))
    print("KERNEL_OK")
</pallas_src>

<mosaic_0001>
module attributes {stable_mosaic.version = 11 : i64} {
  func.func @_dyn_gat_kernel(%arg0: i32, %arg1: memref<2x1x4x16x128xf32, #tpu.memory_space<vmem>>, %arg2: memref<2x1x4x128xi32, #tpu.memory_space<vmem>>, %arg3: memref<128x128xf32, #tpu.memory_space<vmem>>, %arg4: memref<128x16xf32, #tpu.memory_space<vmem>>, %arg5: memref<1x128x128xf32, #tpu.memory_space<vmem>>) attributes {dimension_semantics = [#tpu.dimension_semantics<parallel>], iteration_bounds = array<i64: 2>, scalar_prefetch = 0 : i64, scratch_operands = 0 : i64, tpu.core_type = #tpu.core_type<tc>, window_params = [{transform_indices = @transform_0, window_bounds = array<i64: 2, 1, 4, 16, 128>}, {transform_indices = @transform_1, window_bounds = array<i64: 2, 1, 4, 128>}, {pipeline_mode = #tpu.pipeline_mode<synchronous>, transform_indices = @transform_2, window_bounds = array<i64: 128, 128>}, {pipeline_mode = #tpu.pipeline_mode<synchronous>, transform_indices = @transform_3, window_bounds = array<i64: 128, 16>}, {transform_indices = @transform_4, window_bounds = array<i64: 1, 128, 128>}]} {
    %c0 = arith.constant 0 : index
    %c0_0 = arith.constant 0 : index
    %0 = vector.load %arg3[%c0, %c0_0] : memref<128x128xf32, #tpu.memory_space<vmem>>, vector<128x128xf32>
    %c0_1 = arith.constant 0 : index
    %c0_2 = arith.constant 0 : index
    %1 = vector.load %arg4[%c0_1, %c0_2] : memref<128x16xf32, #tpu.memory_space<vmem>>, vector<128x16xf32>
    %2 = tpu.iota {dimensions = array<i32: 1>} : vector<1x4x1x128xi32>
    %c3_i32 = arith.constant 3 : i32
    %3 = vector.broadcast %c3_i32 : i32 to vector<1x4x1x128xi32>
    %4 = arith.cmpi eq, %2, %3 : vector<1x4x1x128xi32>
    %cst = arith.constant 5.000000e-01 : f32
    %cst_3 = arith.constant 0.166666672 : f32
    %5 = vector.broadcast %cst : f32 to vector<1x4x1x128xf32>
    %6 = vector.broadcast %cst_3 : f32 to vector<1x4x1x128xf32>
    %7 = arith.select %4, %5, %6 : vector<1x4x1x128xi1>, vector<1x4x1x128xf32>
    %8 = tpu.iota {dimensions = array<i32: 2>} : vector<1x1x16x128xi32>
    %c0_4 = arith.constant 0 : index
    %c0_5 = arith.constant 0 : index
    %c0_6 = arith.constant 0 : index
    %c0_7 = arith.constant 0 : index
    %c0_8 = arith.constant 0 : index
    %9 = vector.load %arg1[%c0_4, %c0_5, %c0_6, %c0_7, %c0_8] : memref<2x1x4x16x128xf32, #tpu.memory_space<vmem>>, vector<2x1x4x16x128xf32>
    %10 = vector.shape_cast %9 : vector<2x1x4x16x128xf32> to vector<2x4x16x128xf32>
    %c0_9 = arith.constant 0 : index
    %c0_10 = arith.constant 0 : index
    %c0_11 = arith.constant 0 : index
    %c0_12 = arith.constant 0 : index
    %11 = vector.load %arg2[%c0_9, %c0_10, %c0_11, %c0_12] : memref<2x1x4x128xi32, #tpu.memory_space<vmem>>, vector<2x1x4x128xi32>
    %12 = vector.shape_cast %11 : vector<2x1x4x128xi32> to vector<2x4x128xi32>
    %13 = vector.broadcast %7 : vector<1x4x1x128xf32> to vector<2x4x16x128xf32>
    %14 = arith.mulf %10, %13 : vector<2x4x16x128xf32>
    %15 = vector.shape_cast %12 : vector<2x4x128xi32> to vector<2x4x1x128xi32>
    %16 = vector.broadcast %8 : vector<1x1x16x128xi32> to vector<2x4x16x128xi32>
    %17 = vector.broadcast %15 : vector<2x4x1x128xi32> to vector<2x4x16x128xi32>
    %18 = arith.cmpi eq, %16, %17 : vector<2x4x16x128xi32>
    %cst_13 = arith.constant 1.000000e+00 : f32
    %cst_14 = arith.constant 0.000000e+00 : f32
    %19 = vector.broadcast %cst_13 : f32 to vector<2x4x16x128xf32>
    %20 = vector.broadcast %cst_14 : f32 to vector<2x4x16x128xf32>
    %21 = arith.select %18, %19, %20 : vector<2x4x16x128xi1>, vector<2x4x16x128xf32>
    %22 = vector.shape_cast %21 : vector<2x4x16x128xf32> to vector<128x128xf32>
    %23 = vector.shape_cast %14 : vector<2x4x16x128xf32> to vector<128x128xf32>
    %cst_15 = arith.constant dense<0.000000e+00> : vector<128x128xf32>
    %24 = tpu.matmul %22, %23, %cst_15 {dimension_numbers = #tpu.dot_dimension_numbers<[0], [0], [1], [1], [0, 1, 1, 1], [], []>} : vector<128x128xf32>, vector<128x128xf32>, vector<128x128xf32> -> vector<128x128xf32>
    %25 = arith.mulf %24, %0 : vector<128x128xf32>
    %cst_16 = arith.constant dense<0.000000e+00> : vector<2x16x128xf32>
    %26 = vector.multi_reduction <add>, %14, %cst_16 [1] : vector<2x4x16x128xf32> to vector<2x16x128xf32>
    %27 = vector.extract_strided_slice %26 {offsets = [0, 0, 0], sizes = [1, 16, 128], strides = [1, 1, 1]} : vector<2x16x128xf32> to vector<1x16x128xf32>
    %28 = vector.shape_cast %27 : vector<1x16x128xf32> to vector<16x128xf32>
    %29 = vector.extract_strided_slice %26 {offsets = [1, 0, 0], sizes = [1, 16, 128], strides = [1, 1, 1]} : vector<2x16x128xf32> to vector<1x16x128xf32>
    %30 = vector.shape_cast %29 : vector<1x16x128xf32> to vector<16x128xf32>
    %31 = tpu.concatenate %28, %30 in 1 : vector<16x128xf32>, vector<16x128xf32> -> vector<16x256xf32>
    %cst_17 = arith.constant dense<0.000000e+00> : vector<128x256xf32>
    %32 = tpu.matmul %1, %31, %cst_17 {dimension_numbers = #tpu.dot_dimension_numbers<[1], [0], [0], [1], [0, 0, 1, 1], [], []>} : vector<128x16xf32>, vector<16x256xf32>, vector<128x256xf32> -> vector<128x256xf32>
    %cst_18 = arith.constant 0.000000e+00 : f32
    %33 = vector.broadcast %cst_18 : f32 to vector<128x256xf32>
    %34 = arith.maximumf %32, %33 : vector<128x256xf32>
    %35 = vector.extract_strided_slice %34 {offsets = [0, 0], sizes = [128, 128], strides = [1, 1]} : vector<128x256xf32> to vector<128x128xf32>
    %cst_19 = arith.constant dense<0xFF800000> : vector<128xf32>
    %36 = vector.multi_reduction <maximumf>, %35, %cst_19 [1] : vector<128x128xf32> to vector<128xf32>
    %37 = vector.shape_cast %36 : vector<128xf32> to vector<128x1xf32>
    %38 = vector.broadcast %37 : vector<128x1xf32> to vector<128x128xf32>
    %39 = arith.subf %35, %38 : vector<128x128xf32>
    %40 = math.exp %39 : vector<128x128xf32>
    %cst_20 = arith.constant dense<0.000000e+00> : vector<128xf32>
    %41 = vector.multi_reduction <add>, %40, %cst_20 [1] : vector<128x128xf32> to vector<128xf32>
    %42 = vector.shape_cast %41 : vector<128xf32> to vector<128x1xf32>
    %43 = tpu.reciprocal %42 : vector<128x1xf32> -> vector<128x1xf32>
    %cst_21 = arith.constant 2.000000e-01 : f32
    %44 = vector.broadcast %cst_21 : f32 to vector<128x1xf32>
    %45 = arith.mulf %43, %44 : vector<128x1xf32>
    %46 = vector.broadcast %45 : vector<128x1xf32> to vector<128x128xf32>
    %47 = arith.mulf %40, %46 : vector<128x128xf32>
    %48 = arith.addf %25, %47 : vector<128x128xf32>
    %49 = vector.extract_strided_slice %34 {offsets = [0, 128], sizes = [128, 128], strides = [1, 1]} : vector<128x256xf32> to vector<128x128xf32>
    %cst_22 = arith.constant dense<0xFF800000> : vector<128xf32>
    %50 = vector.multi_reduction <maximumf>, %49, %cst_22 [1] : vector<128x128xf32> to vector<128xf32>
    %51 = vector.shape_cast %50 : vector<128xf32> to vector<128x1xf32>
    %52 = vector.broadcast %51 : vector<128x1xf32> to vector<128x128xf32>
    %53 = arith.subf %49, %52 : vector<128x128xf32>
    %54 = math.exp %53 : vector<128x128xf32>
    %cst_23 = arith.constant dense<0.000000e+00> : vector<128xf32>
    %55 = vector.multi_reduction <add>, %54, %cst_23 [1] : vector<128x128xf32> to vector<128xf32>
    %56 = vector.shape_cast %55 : vector<128xf32> to vector<128x1xf32>
    %57 = tpu.reciprocal %56 : vector<128x1xf32> -> vector<128x1xf32>
    %cst_24 = arith.constant 2.000000e-01 : f32
    %58 = vector.broadcast %cst_24 : f32 to vector<128x1xf32>
    %59 = arith.mulf %57, %58 : vector<128x1xf32>
    %60 = vector.broadcast %59 : vector<128x1xf32> to vector<128x128xf32>
    %61 = arith.mulf %54, %60 : vector<128x128xf32>
    %62 = arith.addf %48, %61 : vector<128x128xf32>
    %c0_25 = arith.constant 0 : index
    %c0_26 = arith.constant 0 : index
    %c0_27 = arith.constant 0 : index
    %63 = vector.load %arg5[%c0_25, %c0_26, %c0_27] : memref<1x128x128xf32, #tpu.memory_space<vmem>>, vector<1x128x128xf32>
    %64 = vector.shape_cast %63 : vector<1x128x128xf32> to vector<128x128xf32>
    %65 = vector.shape_cast %62 : vector<128x128xf32> to vector<1x128x128xf32>
    tpu.vector_store %arg5[%c0_25, %c0_26, %c0_27], %65 {strides = array<i32>} : memref<1x128x128xf32, #tpu.memory_space<vmem>>, vector<1x128x128xf32>,
    return
  }
  func.func @transform_0(%arg0: i32) -> (i32, i32, i32, i32, i32) {
    %c0_i32 = arith.constant 0 : i32
    %c0_i32_0 = arith.constant 0 : i32
    %c0_i32_1 = arith.constant 0 : i32
    %c0_i32_2 = arith.constant 0 : i32
    %c0_i32_3 = arith.constant 0 : i32
    return %c0_i32, %arg0, %c0_i32_0, %c0_i32_1, %c0_i32_2 : i32, i32, i32, i32, i32
  }
  func.func @transform_1(%arg0: i32) -> (i32, i32, i32, i32) {
    %c0_i32 = arith.constant 0 : i32
    %c0_i32_0 = arith.constant 0 : i32
    %c0_i32_1 = arith.constant 0 : i32
    %c0_i32_2 = arith.constant 0 : i32
    return %c0_i32, %arg0, %c0_i32_0, %c0_i32_1 : i32, i32, i32, i32
  }
  func.func @transform_2(%arg0: i32) -> (i32, i32) {
    %c0_i32 = arith.constant 0 : i32
    %c0_i32_0 = arith.constant 0 : i32
    %c0_i32_1 = arith.constant 0 : i32
    return %c0_i32, %c0_i32_0 : i32, i32
  }
  func.func @transform_3(%arg0: i32) -> (i32, i32) {
    %c0_i32 = arith.constant 0 : i32
    %c0_i32_0 = arith.constant 0 : i32
    %c0_i32_1 = arith.constant 0 : i32
    return %c0_i32, %c0_i32_0 : i32, i32
  }
  func.func @transform_4(%arg0: i32) -> (i32, i32, i32) {
    %c0_i32 = arith.constant 0 : i32
    %c0_i32_0 = arith.constant 0 : i32
    %c0_i32_1 = arith.constant 0 : i32
    return %arg0, %c0_i32, %c0_i32_0 : i32, i32, i32
  }
}

</mosaic_0001>

<bundles_post_ra>
// kernel: tpu_custom_call.1
= control target key start
LH: loop header
LB: loop body
LE: loop exit
PB: predicated region body
PF: predicated region fallthrough
CT: control target
= control target key end

     0   :  { %9 = vsyncpa [#allocation3], 0  ;;  %s2705_s0 = inlined_call_operand.hbm [shape: f32[2,2,4,16,128], index: 0, kind: input, shape index: {}]   ;;  %s2706_s1 = inlined_call_operand.vmem [shape: s32[2,2,4,128], index: 1, kind: input, shape index: {}]   ;;  %s2707_s2 = inlined_call_operand.vmem [shape: f32[128,128], index: 2, kind: input, shape index: {}]   ;;  %s2708_s3 = inlined_call_operand.vmem [shape: f32[128,16], index: 3, kind: input, shape index: {}]   ;;  %s2709_s4 = inlined_call_operand.hbm [shape: f32[2,128,128], index: 4, kind: output, shape index: {}]  }
   0x1   :  { %11 = vsyncpa [#allocation3 + $0x1], 0 }
   0x2   :  { %12 = vsyncpa [#allocation4], 0 }
   0x3   :  { %14 = vsyncpa [#allocation4 + $0x1], 0  ;;  %s1858_s15 = smov 0   ;;  %s1860_s16 = smov 0  }
   0x4   :  { %s1862_s17 = smov 0   ;;  %s1864_s18 = smov 0  }
   0x5 LB: > { %s1879_s19 = sadd.s32 4294967295, %s1821_s18   ;;  %s1407_s20 = sadd.s32 4294967294, %s1821_s18   ;;  %s1821_s18 = sphi %s1864_s18, %s2739_s18   ;;  %s1817_s17 = sphi %s1862_s17, %s2738_s17   ;;  %s1813_s16 = sphi %s1860_s16, %s2737_s16   ;;  %s1809_s15 = sphi %s1858_s15, %s2736_s15  }
   0x6   : > { %s1883_s21 = sadd.s32 1, %s1821_s18   ;;  %s27_s22 = sadd.s32 1, %s1817_s17 }
   0x7   : > { %s24_s23 = ssub.s32 %s1821_s18, %s1883_s21  ;;  %p34_p0 = scmp.ne.s32.totalorder %s1817_s17, %s1813_s16 }
   0x8   : > { %p25_p1 = scmp.eq.s32.totalorder %s24_s23, 0  ;;  %p35_p2 = scmp.eq.s32.totalorder %s1821_s18, 0 }
   0x9   : > { %p40_p3 = scmp.ne.s32.totalorder %s1813_s16, %s1809_s15  ;;  %p41_p4 = scmp.eq.s32.totalorder %s1879_s19, 0 }
   0xa   : > { %s1895_s24 = scalar_select %p25_p1, %s1817_s17, %s27_s22  }
   0xb   : > { %p1897_p5 = por %p35_p2, %p34_p0  ;;  %p1901_p6 = por %p41_p4, %p40_p3 }
   0xc   : > { %p132_p7 = scmp.eq.s32.totalorder %s1879_s19, 1  ;;  %p138_p8 = scmp.eq.s32.totalorder %s1407_s20, 1 }
   0xd   : > { %p1409_p11 = scmp.ge.s32.totalorder %s1821_s18, 2 }
   0xe   : > { %p1906_p9 = por %p132_p7, %p34_p0  ;;  %p1910_p10 = por %p138_p8, %p40_p3 }
   0xf   : > { %160 = sbr.rel (%p1409_p11) target bundleno = 40 (0x28), region = 24 }
  0x16   : > { %s1918_s29 = sand.u32 1, %s1817_s17   ;;  %s1444_s5 = sshll.u32 %s1821_s18, 10 }
  0x17   : > { %s1410_s30 = sshll.u32 %s1918_s29, 7  ;;  %s174_s9 = scalar_lea.hbm %s2705_s0, %s1444_s5 }
  0x18   : > { %s1570_s6 = scalar_select %p1897_p5, [#allocation0], [#allocation9] }
  0x19   : > { %s168_s11 = scalar_lea.vmem [#allocation2], %s1410_s30  ;;  %s1823_s13 = smov 2048  }
  0x1a   : > { %s179_s10 = sld [smem:[%s1570_s6]]   ;;  %s187_s12 = sshll.u32 %s168_s11, 4  ;;  %s188_s12 = int_to_ptr.vmem [resolvable:$true] %s187_s12 }
  0x1b   : > { %1571 = sst [smem:[#allocation8]] (%p1897_p5), %s1823_s13  ;;  %s1824_s14 = smov 1024  }
  0x1c   : > { %1572 = sst [smem:[#allocation8 + $0x1]] (%p1897_p5), %s1824_s14  ;;  %s1825_s20 = smov 8  }
  0x1d   : > { %1573 = sst [smem:[#allocation8 + $0x2]] (%p1897_p5), %s1825_s20  ;;  %s1826_s22 = smov 128  }
  0x1e   : > { %1574 = sst [smem:[#allocation8 + $0x3]] (%p1897_p5), %s1826_s22  ;;  %s165_s5 = scalar_lea.sflag [#allocation3], %s1918_s29 }
  0x1f   : > { %1575 = sst [smem:[#allocation8 + $0x4]] (%p1897_p5), %s1826_s22  ;;  %s1827_s6 = smov [#allocation7]  }
  0x20   : > { %s1413_s23 = sshll.u32 %s179_s10, 26  ;;  %1576 = sst [smem:[#allocation8 + $0x5]] (%p1897_p5), %s1825_s20 }
  0x21   : > { %s1414_s30 = sadd.s32 134217728, %s1413_s23  ;;  %209 = sbr.rel (!%p1897_p5) target bundleno = 40 (0x28), region = 32 }
  0x22   : > { %1577 = dma.general (%p1897_p5), %s174_s9, 2048, %s188_s12, %s165_s5, %s1827_s6, [#allocation8], %s1414_s30, 0  }
  0x23   : > { %s1415_s7 = sshll.u32 (%p1897_p5), %s1918_s29, 3  ;;  %s1416_s8 = sshll.u32 (%p1897_p5), %s1821_s18, 2 }
  0x24   : > { %s215_s14 = scalar_lea.vmem (%p1897_p5), %s2706_s1, %s1416_s8  ;;  %s213_s10 = scalar_lea.vmem (%p1897_p5), [#allocation5], %s1415_s7 }
  0x25   : > { %v231_v0 = vld [vmem:[%s215_s14] sm:$0xf] (%p1897_p5)  ;;  %v233_v1 = vld [vmem:[%s215_s14 + $0x8] sm:$0xf] (%p1897_p5) }
  0x26   : > { %232 = vst [vmem:[%s213_s10] sm:$0xf] (%p1897_p5), %v231_v0  ;;  %234 = vst [vmem:[%s213_s10 + $0x4] sm:$0xf] (%p1897_p5), %v233_v1 }
  0x28 PF: > { %p1417_p12 = scmp.ge.s32.totalorder %s1821_s18, 1  ;;  %p260_p13 = scmp.lt.s32.totalorder %s1821_s18, 3 }
  0x2a   : > { %p261_p0 = pnand %p1417_p12, %p260_p13 }
  0x2b   : > { %s1952_s25 = sand.u32 (!%p261_p0), 1, %s1813_s16  }
  0x2c   : > { %264 = sbr.rel (%p261_p0) target bundleno = 730 (0x2da), region = 73  ;;  %s1418_s29 = sshll.u32 (!%p261_p0), %s1952_s25, 7 }
  0x2d   : > { %s267_s9 = scalar_lea.sflag (!%p261_p0), [#allocation3], %s1952_s25  ;;  %s1958_s12 = scalar_lea.vmem (!%p261_p0), [#allocation2], %s1418_s29 }
  0x33   : > { %1800 = dma.done.wait (%p1901_p6), %s267_s9, 2048  }
  0x34   : > { %1802 = vsyncadd (%p1901_p6), %s267_s9, 4294965248  ;;  %v1828_v2 = vmov 0.0   ;;  %v349_v3 = vld [vmem:[%s1958_s12 + $0x40] sm:$0xff]  ;;  %v350_v4 = vld [vmem:[%s1958_s12 + $0x48] sm:$0xff]  ;;  %v338_v6 = vlaneseq  ;;  %v1829_v15 = vmov 1966171168  }
  0x35   : > { %805 = vmatprep.mubr.f32.mxu1 %v1828_v2  ;;  %v351_v5 = vld [vmem:[%s1958_s12 + $0x50] sm:$0xff]  ;;  %v352_v7 = vld [vmem:[%s1958_s12 + $0x58] sm:$0xff]  ;;  %v353_v8 = vld [vmem:[%s1958_s12 + $0x60] sm:$0xff]  ;;  %v1971_v10 = vmul.f32 0.16666667, %v349_v3  ;;  %v384_v16 = vunpack.c.l.s4 %v1829_v15  ;;  %s1419_s26 = sshll.u32 %s1952_s25, 3 }
  0x36   : > { %v354_v9 = vld [vmem:[%s1958_s12 + $0x68] sm:$0xff]  ;;  %v355_v11 = vld [vmem:[%s1958_s12 + $0x70] sm:$0xff]  ;;  %v356_v12 = vld [vmem:[%s1958_s12 + $0x78] sm:$0xff]  ;;  %v1975_v13 = vmul.f32 0.16666667, %v350_v4  ;;  %v1993_v25 = vshrl.u32 %v338_v6, 7 }
  0x37   : > { %v1977_v14 = vmul.f32 0.16666667, %v351_v5  ;;  %v1979_v17 = vmul.f32 0.16666667, %v352_v7  ;;  %v1981_v18 = vmul.f32 0.16666667, %v353_v8  ;;  %v385_v37 = vunpack.c.0.s8 %v384_v16 }
  0x38   : > { %v1983_v19 = vmul.f32 0.16666667, %v354_v9  ;;  %v1985_v20 = vmul.f32 0.5, %v355_v11  ;;  %v341_v22 = vld [vmem:[%s1958_s12] sm:$0xff]  ;;  %v342_v23 = vld [vmem:[%s1958_s12 + $0x8] sm:$0xff]  ;;  %v343_v24 = vld [vmem:[%s1958_s12 + $0x10] sm:$0xff] }
  0x39   : > { %v686_v21 = vadd.f32 %v1977_v14, %v1971_v10  ;;  %v1995_v26 = vmul.f32 0.5, %v356_v12  ;;  %v689_v27 = vadd.f32 %v1979_v17, %v1975_v13  ;;  %v344_v28 = vld [vmem:[%s1958_s12 + $0x18] sm:$0xff]  ;;  %v345_v29 = vld [vmem:[%s1958_s12 + $0x20] sm:$0xff]  ;;  %v346_v30 = vld [vmem:[%s1958_s12 + $0x28] sm:$0xff]  ;;  %v2002_v31 = vmul.f32 0.16666667, %v341_v22 }
  0x3a   : > { %v347_v33 = vld [vmem:[%s1958_s12 + $0x30] sm:$0xff]  ;;  %v348_v34 = vld [vmem:[%s1958_s12 + $0x38] sm:$0xff]  ;;  %v2007_v35 = vmul.f32 0.16666667, %v342_v23  ;;  %v2009_v36 = vmul.f32 0.16666667, %v343_v24  ;;  %v2030_v49 = vsub.s32 %v385_v37, %v1993_v25 }
  0x3b   : > { %v687_v32 = vadd.f32 %v686_v21, %v1981_v18  ;;  %v690_v38 = vadd.f32 %v689_v27, %v1983_v19  ;;  %v2012_v39 = vmul.f32 0.16666667, %v344_v28  ;;  %v2014_v40 = vmul.f32 0.16666667, %v345_v29  ;;  %s2040_s20 = scalar_lea.vmem [#allocation5], %s1419_s26  ;;  %v322_v62 = vld [vmem:[%s2708_s3] sm:$0xff] }
  0x3c   : > { %v2016_v41 = vmul.f32 0.16666667, %v346_v30  ;;  %v2019_v43 = vmul.f32 0.5, %v347_v33  ;;  %v680_v44 = vadd.f32 %v2009_v36, %v2002_v31  ;;  %v2024_v46 = vmul.f32 0.5, %v348_v34  ;;  %v323_v1 = vld [vmem:[%s2708_s3 + $0x8] sm:$0xff]  ;;  %v324_v5 = vld [vmem:[%s2708_s3 + $0x10] sm:$0xff] }
  0x3d   : > { %v688_v42 = vadd.f32 %v687_v32, %v1985_v20  ;;  %v691_v45 = vadd.f32 %v690_v38, %v1995_v26  ;;  %v683_v47 = vadd.f32 %v2012_v39, %v2007_v35  ;;  %v2035_v53 = vsub.s32 0, %v1993_v25  ;;  %v1421_v55 = vld.sshfl [vmem:[%s2040_s20] sm:$0x33 pattern:$0x75316420]  ;;  %v325_v8 = vld [vmem:[%s2708_s3 + $0x18] sm:$0xff] }
  0x3e   : > { %v681_v48 = vadd.f32 %v680_v44, %v2014_v40  ;;  %v389_v56 = vrot.slane %v1421_v55, %v2030_v49  ;;  %v382_v57 = vcombine.high %v1421_v55, %v1421_v55  ;;  %v2045_v58 = vadd.s32 8, %v1993_v25  ;;  %v326_v12 = vld [vmem:[%s2708_s3 + $0x20] sm:$0xff]  ;;  %v327_v22 = vld [vmem:[%s2708_s3 + $0x28] sm:$0xff]  ;;  %v328_v27 = vld [vmem:[%s2708_s3 + $0x30] sm:$0xff]  ;;  %s2552_s8 = scalar_lea.vmem [#allocation6], %s1418_s29  ;;  %s1445_s6 = sshll.u32 %s1879_s19, 11 }
  0x3f   : > { %v1566_v50 = vpack.c.bf16 %v691_v45, %v688_v42  ;;  %v684_v51 = vadd.f32 %v683_v47, %v2016_v41  ;;  %vm692_vm0 = vcmask 130048   ;;  %v1422_v21 = vld.sshfl [vmem:[%s2040_s20 + $0x4] sm:$0x33 pattern:$0x75316420]  ;;  %v329_v32 = vld [vmem:[%s2708_s3 + $0x38] sm:$0xff]  ;;  %s2657_s29 = scalar_lea.hbm %s2709_s4, %s1445_s6 }
  0x40   : > { %v682_v52 = vadd.f32 %v681_v48, %v2019_v43  ;;  %v426_v60 = vrot.slane %v389_v56, %v2035_v53  ;;  %v396_v61 = vrot.slane %v382_v57, %v2030_v49  ;;  %v397_v4 = vcombine.high %v389_v56, %v389_v56  ;;  %v330_v37 = vld [vmem:[%s2708_s3 + $0x40] sm:$0xff]  ;;  %v331_v44 = vld [vmem:[%s2708_s3 + $0x48] sm:$0xff]  ;;  %v332_v48 = vld [vmem:[%s2708_s3 + $0x50] sm:$0xff]  ;;  %s1316_s7 = sshll.u32 %s2552_s8, 4  ;;  %s1303_s19 = scalar_lea.sflag [#allocation4], %s1952_s25  ;;  %s2659_s7 = int_to_ptr.vmem [resolvable:$true] %s1316_s7 }
  0x41   : > { %1567 = vmatprep.subr.bf16.mxu1 %v1566_v50  ;;  %v685_v54 = vadd.f32 %v684_v51, %v2024_v46  ;;  %v413_v24 = vrot.slane %v1422_v21, %v2030_v49  ;;  %v406_v30 = vcombine.high %v1422_v21, %v1422_v21  ;;  %v333_v51 = vld [vmem:[%s2708_s3 + $0x58] sm:$0xff]  ;;  %v334_v55 = vld [vmem:[%s2708_s3 + $0x60] sm:$0xff]  ;;  %s1755_s14 = scalar_lea.vmem %s2659_s7, 2048  ;;  %s1830_s10 = smov [#allocation6]  }
  0x42   : > { %vm455_vm1 = vcmp.eq.s32.totalorder %v1993_v25, %v426_v60  ;;  %vm456_vm2 = vcmp.eq.s32.totalorder %v2045_v58, %v426_v60  ;;  %v430_v63 = vrot.slane %v396_v61, %v2035_v53  ;;  %v434_v7 = vrot.slane %v397_v4, %v2035_v53  ;;  %p1756_p1 = scmp.ne.s32.totalorder %s2659_s7, %s1755_s14  ;;  %s1759_s9 = sshll.u32 %s1830_s10, 4  ;;  %s1760_s9 = int_to_ptr.vmem [resolvable:$false] %s1759_s9 }
  0x43   : > { %v1568_v59 = vpack.c.bf16 %v685_v54, %v682_v52  ;;  %v471_v0 = vsel %vm455_vm1, 1.0, %v1828_v2  ;;  %v472_v3 = vsel %vm456_vm2, 1.0, %v1828_v2  ;;  %v398_v11 = vcombine.high %v396_v61, %v396_v61  ;;  %s1761_s12 = scalar_lea.vmem %s1760_s9, 4096  ;;  %p1762_p4 = scmp.lt.s32.totalorder %s2659_s7, %s1760_s9 }
  0x44   : > { %487 = vxpose.xlu0.b32.start [1/16] %v471_v0, 128  ;;  %vm457_vm3 = vcmp.eq.s32.totalorder %v1993_v25, %v430_v63  ;;  %vm458_vm4 = vcmp.eq.s32.totalorder %v2045_v58, %v430_v63  ;;  %vm459_vm5 = vcmp.eq.s32.totalorder %v1993_v25, %v434_v7  ;;  %vm460_vm6 = vcmp.eq.s32.totalorder %v2045_v58, %v434_v7  ;;  %p1757_p2 = pnand %p1756_p1, %p1906_p9  ;;  %p1763_p5 = scmp.lt.s32.totalorder %s1761_s12, %s1755_s14 }
  0x45   : > { %1569 = vmatpush1.bf16.msra.mxu1 %v1568_v59  ;;  %v473_v6 = vsel %vm457_vm3, 1.0, %v1828_v2  ;;  %v474_v9 = vsel %vm458_vm4, 1.0, %v1828_v2  ;;  %v475_v15 = vsel %vm459_vm5, 1.0, %v1828_v2  ;;  %v438_v16 = vrot.slane %v398_v11, %v2035_v53  ;;  %v335_v59 = vld [vmem:[%s2708_s3 + $0x68] sm:$0xff] }
  0x46   : > { %v476_v23 = vsel %vm460_vm6, 1.0, %v1828_v2  ;;  %v442_v29 = vrot.slane %v413_v24, %v2035_v53  ;;  %v420_v34 = vrot.slane %v406_v30, %v2030_v49  ;;  %v421_v47 = vcombine.high %v413_v24, %v413_v24  ;;  %p1758_p3 = pneg %p1757_p2  ;;  %p1764_p6 = por %p1763_p5, %p1762_p4 }
  0x47   : > { %vm461_vm7 = vcmp.eq.s32.totalorder %v1993_v25, %v438_v16  ;;  %vm462_vm8 = vcmp.eq.s32.totalorder %v2045_v58, %v438_v16  ;;  %v1534_v63 = vpack.c.bf16 %v2007_v35, %v2002_v31  ;;  %v1542_v0 = vpack.c.bf16 %v2016_v41, %v2014_v40 }
  0x48   : > { %1423 = vmatmul.mubr.msk.f32.vlgmr.msra.gmra.mrb[0].mxu1 %vm692_vm0, %v322_v62  ;;  %488 = vxpose.xlu0.b32.cont [2/16] %v472_v3, 128  ;;  %v477_v28 = vsel %vm461_vm7, 1.0, %v1828_v2  ;;  %v478_v33 = vsel %vm462_vm8, 1.0, %v1828_v2  ;;  %vm463_vm9 = vcmp.eq.s32.totalorder %v1993_v25, %v442_v29  ;;  %vm464_vm10 = vcmp.eq.s32.totalorder %v2045_v58, %v442_v29  ;;  %p1765_p7 = pnand %p1764_p6, %p1758_p3 }
  0x49   : > { %811 = vmatprep.mubr.f32.mxu1 %v1828_v2  ;;  %v479_v38 = vsel %vm463_vm9, 1.0, %v1828_v2  ;;  %v446_v42 = vrot.slane %v420_v34, %v2035_v53  ;;  %v480_v45 = vsel %vm464_vm10, 1.0, %v1828_v2  ;;  %v450_v50 = vrot.slane %v421_v47, %v2035_v53  ;;  %1535 = vmatprep.subr.bf16.mxu0 %v1534_v63 }
  0x4a   : > { %v422_v54 = vcombine.high %v420_v34, %v420_v34  ;;  %1537 = vmatpush3.bf16.msra.mxu0 %v1534_v63  ;;  %v1550_v35 = vpack.c.bf16 %v1975_v13, %v1971_v10  ;;  %v1558_v41 = vpack.c.bf16 %v1983_v19, %v1981_v18 }
  0x4b   : > { %vm465_vm11 = vcmp.eq.s32.totalorder %v1993_v25, %v446_v42  ;;  %vm466_vm12 = vcmp.eq.s32.totalorder %v2045_v58, %v446_v42  ;;  %vm467_vm13 = vcmp.eq.s32.totalorder %v1993_v25, %v450_v50  ;;  %vm468_vm14 = vcmp.eq.s32.totalorder %v2045_v58, %v450_v50 }
  0x4c   : > { %1424 = vmatmul.mubr.msk.f32.gmra.mrb[2].mxu1 %vm692_vm0, %v323_v1  ;;  %489 = vxpose.xlu0.b32.cont [3/16] %v473_v6, 128  ;;  %v481_v49 = vsel %vm465_vm11, 1.0, %v1828_v2  ;;  %v482_v52 = vsel %vm466_vm12, 1.0, %v1828_v2  ;;  %v483_v56 = vsel %vm467_vm13, 1.0, %v1828_v2  ;;  %v454_v57 = vrot.slane %v422_v54, %v2035_v53  ;;  %v336_v53 = vld [vmem:[%s2708_s3 + $0x70] sm:$0xff] }
  0x4d   : > { %817 = vmatprep.mubr.f32.mxu1 %v1828_v2  ;;  %v484_v60 = vsel %vm468_vm14, 1.0, %v1828_v2 }
  0x4e   : > { %vm469_vm15 = vcmp.eq.s32.totalorder %v1993_v25, %v454_v57  ;;  %vm470_vm1 = vcmp.eq.s32.totalorder %v2045_v58, %v454_v57  ;;  %v337_v25 = vld [vmem:[%s2708_s3 + $0x78] sm:$0xff]  ;;  %v1538_v58 = vpack.c.bf16 %v2012_v39, %v2009_v36  ;;  %v1554_v39 = vpack.c.bf16 %v1979_v17, %v1977_v14 }
  0x4f   : > { %v485_v61 = vsel %vm469_vm15, 1.0, %v1828_v2  ;;  %v486_v62 = vsel %vm470_vm1, 1.0, %v1828_v2 }
  0x50   : > { %1425 = vmatmul.mubr.msk.f32.gmra.mrb[4].mxu1 %vm692_vm0, %v324_v5  ;;  %490 = vxpose.xlu0.b32.cont [4/16] %v474_v9, 128 }
  0x51   : > { %823 = vmatprep.mubr.f32.mxu1 %v1828_v2  ;;  %1539 = vmatprep.subr.bf16.mxu0 %v1538_v58 }
  0x52   : > { %1541 = vmatpush3.bf16.msra.mxu0 %v1538_v58 }
  0x53   : > { %1543 = vmatprep.subr.bf16.mxu0 %v1542_v0 }
  0x54   : > { %1426 = vmatmul.mubr.msk.f32.gmra.mrb[6].mxu1 %vm692_vm0, %v325_v8  ;;  %491 = vxpose.xlu0.b32.cont [5/16] %v475_v15, 128 }
  0x55   : > { %829 = vmatprep.mubr.f32.mxu1 %v1828_v2 }
  0x56   : > { %1545 = vmatpush3.bf16.msra.mxu0 %v1542_v0 }
  0x58   : > { %1427 = vmatmul.mubr.msk.f32.gmra.mrb[8].mxu1 %vm692_vm0, %v326_v12  ;;  %492 = vxpose.xlu0.b32.cont [6/16] %v476_v23, 128 }
  0x59   : > { %835 = vmatprep.mubr.f32.mxu1 %v1828_v2 }
  0x5c   : > { %1428 = vmatmul.mubr.msk.f32.gmra.mrb[10].mxu1 %vm692_vm0, %v327_v22  ;;  %493 = vxpose.xlu0.b32.cont [7/16] %v477_v28, 128 }
  0x5d   : > { %841 = vmatprep.mubr.f32.mxu1 %v1828_v2 }
  0x60   : > { %1429 = vmatmul.mubr.msk.f32.gmra.mrb[12].mxu1 %vm692_vm0, %v328_v27  ;;  %494 = vxpose.xlu0.b32.cont [8/16] %v478_v33, 128 }
  0x61   : > { %847 = vmatprep.mubr.f32.mxu1 %v1828_v2 }
  0x64   : > { %1430 = vmatmul.mubr.msk.f32.gmra.mrb[14].mxu1 %vm692_vm0, %v329_v32  ;;  %495 = vxpose.xlu0.b32.cont [9/16] %v479_v38, 128 }
  0x65   : > { %853 = vmatprep.mubr.f32.mxu1 %v1828_v2 }
  0x68   : > { %1431 = vmatmul.mubr.msk.f32.gmra.mrb[16].mxu1 %vm692_vm0, %v330_v37  ;;  %496 = vxpose.xlu0.b32.cont [10/16] %v480_v45, 128 }
  0x69   : > { %859 = vmatprep.mubr.f32.mxu1 %v1828_v2 }
  0x6c   : > { %1432 = vmatmul.mubr.msk.f32.gmra.mrb[18].mxu1 %vm692_vm0, %v331_v44  ;;  %497 = vxpose.xlu0.b32.cont [11/16] %v481_v49, 128 }
  0x6d   : > { %865 = vmatprep.mubr.f32.mxu1 %v1828_v2 }
  0x70   : > { %1433 = vmatmul.mubr.msk.f32.gmra.mrb[20].mxu1 %vm692_vm0, %v332_v48  ;;  %498 = vxpose.xlu0.b32.cont [12/16] %v482_v52, 128 }
  0x71   : > { %871 = vmatprep.mubr.f32.mxu1 %v1828_v2 }
  0x74   : > { %1434 = vmatmul.mubr.msk.f32.gmra.mrb[22].mxu1 %vm692_vm0, %v333_v51  ;;  %499 = vxpose.xlu0.b32.cont [13/16] %v483_v56, 128 }
  0x75   : > { %877 = vmatprep.mubr.f32.mxu1 %v1828_v2 }
  0x78   : > { %1435 = vmatmul.mubr.msk.f32.gmra.mrb[24].mxu1 %vm692_vm0, %v334_v55  ;;  %500 = vxpose.xlu0.b32.cont [14/16] %v484_v60, 128 }
  0x79   : > { %883 = vmatprep.mubr.f32.mxu1 %v1828_v2 }
  0x7c   : > { %1436 = vmatmul.mubr.msk.f32.gmra.mrb[26].mxu1 %vm692_vm0, %v335_v59  ;;  %501 = vxpose.xlu0.b32.cont [15/16] %v485_v61, 128 }
  0x7d   : > { %889 = vmatprep.mubr.f32.mxu1 %v1828_v2 }
  0x80   : > { %1437 = vmatmul.mubr.msk.f32.gmra.mrb[28].mxu1 %vm692_vm0, %v336_v53  ;;  %502 = vxpose.xlu0.b32.end [16/16] %v486_v62, 128 }
  0x81   : > { %895 = vmatprep.mubr.f32.mxu1 %v1828_v2  ;;  %v1546_v2 = vpack.c.bf16 %v2024_v46, %v2019_v43  ;;  %v1562_v46 = vpack.c.bf16 %v1995_v26, %v1985_v20 }
  0x83   : > { %1547 = vmatprep.subr.bf16.mxu0 %v1546_v2 }
  0x84   : > { %1438 = vmatmul.mubr.msk.f32.gmra.mrb[30].mxu1 %vm692_vm0, %v337_v25  ;;  %1549 = vmatpush3.bf16.msra.mxu0 %v1546_v2 }
  0x85   : > { %1551 = vmatprep.subr.bf16.mxu0 %v1550_v35 }
  0x88   : > { %1553 = vmatpush3.bf16.msra.mxu0 %v1550_v35 }
  0x89   : > { %1555 = vmatprep.subr.bf16.mxu0 %v1554_v39 }
  0x8c   : > { %1557 = vmatpush3.bf16.msra.mxu0 %v1554_v39 }
  0x8d   : > { %1559 = vmatprep.subr.bf16.mxu0 %v1558_v41 }
  0x90   : > { %1561 = vmatpush3.bf16.msra.mxu0 %v1558_v41 }
  0x91   : > { %1563 = vmatprep.subr.bf16.mxu0 %v1562_v46 }
  0x94   : > { %1565 = vmatpush3.bf16.msra.mxu0 %v1562_v46 }
  0xc4   : > { %v503_v1 = vpop.trf.xlu0 }
  0xc5   : > { %1510 = vmatprep.mubr.f32.mxu0 %v503_v1 }
  0xc8   : > { %v504_v31 = vpop.trf.xlu0 }
  0xc9   : > { %1511 = vmatmul.mubr.f32.vlgmr.msra.gmra.mrb[0].mxu0 %v504_v31 }
  0xcc   : > { %v505_v36 = vpop.trf.xlu0 }
  0xcd   : > { %1513 = vmatprep.mubr.f32.mxu0 %v505_v36 }
  0xd0   : > { %v506_v40 = vpop.trf.xlu0 }
  0xd1   : > { %1514 = vmatmul.mubr.f32.gmra.mrb[2].mxu0 %v506_v40 }
  0xd4   : > { %v507_v43 = vpop.trf.xlu0 }
  0xd5   : > { %1516 = vmatprep.mubr.f32.mxu0 %v507_v43 }
  0xd8   : > { %v508_v10 = vpop.trf.xlu0 }
  0xd9   : > { %1517 = vmatmul.mubr.f32.gmra.mrb[4].mxu0 %v508_v10 }
  0xdc   : > { %v509_v13 = vpop.trf.xlu0 }
  0xdd   : > { %1519 = vmatprep.mubr.f32.mxu0 %v509_v13 }
  0xe0   : > { %v510_v14 = vpop.trf.xlu0 }
  0xe1   : > { %1520 = vmatmul.mubr.f32.gmra.mrb[6].mxu0 %v510_v14 }
  0xe4   : > { %v511_v17 = vpop.trf.xlu0 }
  0xe5   : > { %1522 = vmatprep.mubr.f32.mxu0 %v511_v17 }
  0xe8   : > { %v512_v18 = vpop.trf.xlu0 }
  0xe9   : > { %1523 = vmatmul.mubr.f32.gmra.mrb[8].mxu0 %v512_v18 }
  0xec   : > { %v513_v19 = vpop.trf.xlu0 }
  0xed   : > { %1525 = vmatprep.mubr.f32.mxu0 %v513_v19 }
  0xf0   : > { %v514_v3 = vpop.trf.xlu0 }
  0xf1   : > { %1526 = vmatmul.mubr.f32.gmra.mrb[10].mxu0 %v514_v3 }
  0xf4   : > { %v515_v20 = vpop.trf.xlu0 }
  0xf5   : > { %1528 = vmatprep.mubr.f32.mxu0 %v515_v20 }
  0xf8   : > { %v516_v7 = vpop.trf.xlu0 }
  0xf9   : > { %1529 = vmatmul.mubr.f32.gmra.mrb[12].mxu0 %v516_v7 }
  0xfc   : > { %v517_v12 = vpop.trf.xlu0 }
  0xfd   : > { %1531 = vmatprep.mubr.f32.mxu0 %v517_v12 }
 0x100   : > { %v518_v23 = vpop.trf.xlu0 }
 0x101   : > { %1532 = vmatmul.mubr.f32.gmra.mrb[14].mxu0 %v518_v23 }
 0x11b   : > { %v2186_v26 = vpop.f32.mrb[0].mxu1 }
 0x11c   : > { %v902_v4 = vmax.f32 %v2186_v26, 0.0  ;;  %v2189_v5 = vpop.f32.mrb[1].mxu1 }
 0x11d   : > { %v903_v6 = vmax.f32 %v2189_v5, 0.0 }
 0x11e   : > { %934 = vmax.xlane.f32.xlu1 %v902_v4 }
 0x11f   : > { %1110 = vmax.xlane.f32.xlu0 %v903_v6  ;;  %v2196_v8 = vpop.f32.mrb[2].mxu1 }
 0x120   : > { %v904_v9 = vmax.f32 %v2196_v8, 0.0  ;;  %v2199_v11 = vpop.f32.mrb[3].mxu1 }
 0x121   : > { %v905_v16 = vmax.f32 %v2199_v11, 0.0 }
 0x122   : > { %936 = vmax.xlane.f32.xlu1 %v904_v9 }
 0x123   : > { %v2203_v15 = vpop.f32.mrb[4].mxu1 }
 0x124   : > { %v2206_v21 = vpop.f32.mrb[5].mxu1  ;;  %v906_v22 = vmax.f32 %v2203_v15, 0.0 }
 0x125   : > { %v907_v29 = vmax.f32 %v2206_v21, 0.0 }
 0x126   : > { %1112 = vmax.xlane.f32.xlu1 %v905_v16 }
 0x127   : > { %v2211_v24 = vpop.f32.mrb[6].mxu1 }
 0x128   : > { %v2213_v27 = vpop.f32.mrb[7].mxu1  ;;  %v908_v32 = vmax.f32 %v2211_v24, 0.0 }
 0x129   : > { %v909_v38 = vmax.f32 %v2213_v27, 0.0 }
 0x12a   : > { %938 = vmax.xlane.f32.xlu1 %v906_v22 }
 0x12b   : > { %v2217_v28 = vpop.f32.mrb[8].mxu1 }
 0x12c   : > { %v2220_v30 = vpop.f32.mrb[9].mxu1  ;;  %v910_v44 = vmax.f32 %v2217_v28, 0.0 }
 0x12d   : > { %v911_v49 = vmax.f32 %v2220_v30, 0.0 }
 0x12e   : > { %1114 = vmax.xlane.f32.xlu1 %v907_v29 }
 0x12f   : > { %v2225_v33 = vpop.f32.mrb[10].mxu1 }
 0x130   : > { %v2227_v34 = vpop.f32.mrb[11].mxu1  ;;  %v912_v51 = vmax.f32 %v2225_v33, 0.0 }
 0x131   : > { %v913_v56 = vmax.f32 %v2227_v34, 0.0 }
 0x132   : > { %940 = vmax.xlane.f32.xlu1 %v908_v32 }
 0x133   : > { %v2231_v37 = vpop.f32.mrb[12].mxu1 }
 0x134   : > { %v2234_v42 = vpop.f32.mrb[13].mxu1  ;;  %v914_v59 = vmax.f32 %v2231_v37, 0.0 }
 0x135   : > { %v915_v25 = vmax.f32 %v2234_v42, 0.0 }
 0x136   : > { %1116 = vmax.xlane.f32.xlu1 %v909_v38 }
 0x137   : > { %v2239_v45 = vpop.f32.mrb[14].mxu1 }
 0x138   : > { %v2241_v47 = vpop.f32.mrb[15].mxu1  ;;  %v916_v63 = vmax.f32 %v2239_v45, 0.0 }
 0x139   : > { %v917_v31 = vmax.f32 %v2241_v47, 0.0 }
 0x13a   : > { %942 = vmax.xlane.f32.xlu1 %v910_v44 }
 0x13b   : > { %v2245_v48 = vpop.f32.mrb[16].mxu1 }
 0x13c   : > { %v2248_v50 = vpop.f32.mrb[17].mxu1  ;;  %v918_v36 = vmax.f32 %v2245_v48, 0.0 }
 0x13d   : > { %v919_v43 = vmax.f32 %v2248_v50, 0.0 }
 0x13e   : > { %1118 = vmax.xlane.f32.xlu1 %v911_v49 }
 0x13f   : > { %v2253_v52 = vpop.f32.mrb[18].mxu1 }
 0x140   : > { %v2255_v54 = vpop.f32.mrb[19].mxu1  ;;  %v920_v46 = vmax.f32 %v2253_v52, 0.0 }
 0x141   : > { %v921_v10 = vmax.f32 %v2255_v54, 0.0 }
 0x142   : > { %944 = vmax.xlane.f32.xlu1 %v912_v51 }
 0x143   : > { %v2259_v55 = vpop.f32.mrb[20].mxu1 }
 0x144   : > { %v2262_v57 = vpop.f32.mrb[21].mxu1  ;;  %v922_v13 = vmax.f32 %v2259_v55, 0.0 }
 0x145   : > { %v2719_v14 = vmax.f32 %v2262_v57, 0.0  ;;  %v2725_v54 = vmax.f32 %v2262_v57, 0.0 }
 0x146   : > { %1120 = vmax.xlane.f32.xlu1 %v913_v56 }
 0x147   : > { %v2267_v60 = vpop.f32.mrb[22].mxu1 }
 0x148   : > { %v2269_v53 = vpop.f32.mrb[23].mxu1  ;;  %v2716_v17 = vmax.f32 %v2267_v60, 0.0  ;;  %v2726_v55 = vmax.f32 %v2267_v60, 0.0 }
 0x149   : > { %v2715_v18 = vmax.f32 %v2269_v53, 0.0  ;;  %v2727_v57 = vmax.f32 %v2269_v53, 0.0 }
 0x14a   : > { %946 = vmax.xlane.f32.xlu1 %v914_v59 }
 0x14b   : > { %v2273_v61 = vpop.f32.mrb[24].mxu1 }
 0x14c   : > { %v2276_v62 = vpop.f32.mrb[25].mxu1  ;;  %v2714_v19 = vmax.f32 %v2273_v61, 0.0  ;;  %v2728_v60 = vmax.f32 %v2273_v61, 0.0 }
 0x14d   : > { %v2712_v3 = vmax.f32 %v2276_v62, 0.0  ;;  %v2729_v53 = vmax.f32 %v2276_v62, 0.0 }
 0x14e   : > { %1122 = vmax.xlane.f32.xlu1 %v915_v25 }
 0x14f   : > { %v2281_v58 = vpop.f32.mrb[26].mxu1 }
 0x150   : > { %v2283_v0 = vpop.f32.mrb[27].mxu1  ;;  %v2713_v20 = vmax.f32 %v2281_v58, 0.0  ;;  %v2731_v61 = vmax.f32 %v2281_v58, 0.0 }
 0x151   : > { %v2711_v1 = vmax.f32 %v2283_v0, 0.0 }
 0x152   : > { %948 = vmax.xlane.f32.xlu1 %v916_v63 }
 0x153   : > { %1136 = vmax.xlane.f32.xlu0 %v2711_v1  ;;  %v2290_v2 = vpop.f32.mrb[28].mxu1 }
 0x154   : > { %v2293_v35 = vpop.f32.mrb[29].mxu1  ;;  %v2718_v7 = vmax.f32 %v2290_v2, 0.0 }
 0x155   : > { %v2720_v23 = vmax.f32 %v2293_v35, 0.0 }
 0x156   : > { %1124 = vmax.xlane.f32.xlu1 %v917_v31 }
 0x157   : > { %v2298_v39 = vpop.f32.mrb[30].mxu1 }
 0x158   : > { %v2300_v40 = vpop.f32.mrb[31].mxu1  ;;  %v2717_v12 = vmax.f32 %v2298_v39, 0.0 }
 0x159   : > { %v2710_v41 = vmax.f32 %v2300_v40, 0.0 }
 0x15a   : > { %950 = vmax.xlane.f32.xlu1 %v918_v36 }
 0x15b   : > { %1140 = vmax.xlane.f32.xlu0 %v2710_v41 }
 0x15e   : > { %1126 = vmax.xlane.f32.xlu1 %v919_v43 }
 0x162   : > { %952 = vmax.xlane.f32.xlu1 %v920_v46 }
 0x166   : > { %1128 = vmax.xlane.f32.xlu1 %v921_v10 }
 0x16a   : > { %954 = vmax.xlane.f32.xlu1 %v922_v13 }
 0x16e   : > { %1130 = vmax.xlane.f32.xlu1 %v2719_v14 }
 0x172   : > { %956 = vmax.xlane.f32.xlu1 %v2716_v17 }
 0x176   : > { %1132 = vmax.xlane.f32.xlu1 %v2715_v18 }
 0x17a   : > { %958 = vmax.xlane.f32.xlu1 %v2714_v19 }
 0x17e   : > { %1134 = vmax.xlane.f32.xlu1 %v2712_v3 }
 0x182   : > { %960 = vmax.xlane.f32.xlu1 %v2713_v20 }
 0x186   : > { %962 = vmax.xlane.f32.xlu1 %v2718_v7 }
 0x18a   : > { %964 = vmax.xlane.f32.xlu1 %v2717_v12 }
 0x18e   : > { %1138 = vmax.xlane.f32.xlu1 %v2720_v23 }
 0x1ab   : > { %v935_v41 = vpop.xlane.xlu1 %934 }
 0x1ac   : > { %v966_v1 = vsub.f32 %v902_v4, %v935_v41  ;;  %v1111_v3 = vpop.xlane.xlu0 %1110 }
 0x1ad   : > { %v1142_v20 = vsub.f32 %v903_v6, %v1111_v3 }
 0x1ae   : > { %v982_v19 = vmul.f32 1.442695, %v966_v1 }
 0x1af   : > { %v1158_v18 = vmul.f32 1.442695, %v1142_v20  ;;  %v937_v17 = vpop.xlane.xlu1 %936 }
 0x1b0   : > { %1627 = vpow2.f32 %v982_v19  ;;  %v967_v12 = vsub.f32 %v904_v9, %v937_v17 }
 0x1b1   : > { %1629 = vpow2.f32 %v1158_v18 }
 0x1b2   : > { %v984_v7 = vmul.f32 1.442695, %v967_v12 }
 0x1b3   : > { %v1113_v14 = vpop.xlane.xlu1 %1112 }
 0x1b4   : > { %1631 = vpow2.f32 %v984_v7  ;;  %v1143_v23 = vsub.f32 %v905_v16, %v1113_v14 }
 0x1b6   : > { %v1160_v26 = vmul.f32 1.442695, %v1143_v23 }
 0x1b7   : > { %v939_v4 = vpop.xlane.xlu1 %938 }
 0x1b8   : > { %1633 = vpow2.f32 %v1160_v26  ;;  %v968_v5 = vsub.f32 %v906_v22, %v939_v4 }
 0x1ba   : > { %v2356_v6 = vpop.eup %1627  ;;  %v986_v1 = vmul.f32 1.442695, %v968_v5 }
 0x1bb   : > { %v1115_v41 = vpop.xlane.xlu1 %1114  ;;  %1014 = vadd.xlane.f32.xlu1 %v2356_v6  ;;  %v2361_v9 = vpop.eup %1629 }
 0x1bc   : > { %1635 = vpow2.f32 %v986_v1  ;;  %v1144_v8 = vsub.f32 %v907_v29, %v1115_v41 }
 0x1be   : > { %v2363_v11 = vpop.eup %1631  ;;  %v1162_v16 = vmul.f32 1.442695, %v1144_v8 }
 0x1bf   : > { %v941_v14 = vpop.xlane.xlu1 %940  ;;  %1190 = vadd.xlane.f32.xlu1 %v2361_v9  ;;  %1016 = vadd.xlane.f32.xlu0 %v2363_v11 }
 0x1c0   : > { %1637 = vpow2.f32 %v1162_v16  ;;  %v969_v15 = vsub.f32 %v908_v32, %v941_v14 }
 0x1c2   : > { %v2369_v22 = vpop.eup %1633  ;;  %v988_v17 = vmul.f32 1.442695, %v969_v15 }
 0x1c3   : > { %v1117_v18 = vpop.xlane.xlu1 %1116  ;;  %1192 = vadd.xlane.f32.xlu0 %v2369_v22 }
 0x1c4   : > { %1639 = vpow2.f32 %v988_v17  ;;  %v1145_v21 = vsub.f32 %v909_v38, %v1117_v18 }
 0x1c6   : > { %v2374_v29 = vpop.eup %1635  ;;  %v1164_v19 = vmul.f32 1.442695, %v1145_v21 }
 0x1c7   : > { %v943_v3 = vpop.xlane.xlu1 %942  ;;  %1018 = vadd.xlane.f32.xlu1 %v2374_v29 }
 0x1c8   : > { %1641 = vpow2.f32 %v1164_v19  ;;  %v970_v24 = vsub.f32 %v910_v44, %v943_v3 }
 0x1ca   : > { %v2379_v32 = vpop.eup %1637  ;;  %v990_v20 = vmul.f32 1.442695, %v970_v24 }
 0x1cb   : > { %v1119_v7 = vpop.xlane.xlu1 %1118  ;;  %1194 = vadd.xlane.f32.xlu1 %v2379_v32 }
 0x1cc   : > { %1643 = vpow2.f32 %v990_v20  ;;  %v1146_v27 = vsub.f32 %v911_v49, %v1119_v7  ;;  %v2394_v49 = vpop.f32.mrb[0].mxu0 }
 0x1cd   : > { %v2398_v41 = vpop.f32.mrb[1].mxu0 }
 0x1ce   : > { %v2384_v38 = vpop.eup %1639  ;;  %v1166_v12 = vmul.f32 1.442695, %v1146_v27 }
 0x1cf   : > { %v945_v23 = vpop.xlane.xlu1 %944  ;;  %1020 = vadd.xlane.f32.xlu0 %v2384_v38 }
 0x1d0   : > { %1645 = vpow2.f32 %v1166_v12  ;;  %v971_v28 = vsub.f32 %v912_v51, %v945_v23 }
 0x1d2   : > { %v2389_v44 = vpop.eup %1641  ;;  %v992_v26 = vmul.f32 1.442695, %v971_v28 }
 0x1d3   : > { %v1121_v4 = vpop.xlane.xlu1 %1120  ;;  %1196 = vadd.xlane.f32.xlu0 %v2389_v44 }
 0x1d4   : > { %1647 = vpow2.f32 %v992_v26  ;;  %v1147_v30 = vsub.f32 %v913_v56, %v1121_v4 }
 0x1d6   : > { %v2396_v5 = vpop.eup %1643  ;;  %v1168_v1 = vmul.f32 1.442695, %v1147_v30 }
 0x1d7   : > { %v947_v8 = vpop.xlane.xlu1 %946  ;;  %1022 = vadd.xlane.f32.xlu1 %v2396_v5 }
 0x1d8   : > { %1649 = vpow2.f32 %v1168_v1  ;;  %v972_v33 = vsub.f32 %v914_v59, %v947_v8  ;;  %v2413_v59 = vpop.f32.mrb[2].mxu0 }
 0x1d9   : > { %v2417_v19 = vpop.f32.mrb[3].mxu0 }
 0x1da   : > { %v2403_v51 = vpop.eup %1645  ;;  %v994_v16 = vmul.f32 1.442695, %v972_v33 }
 0x1db   : > { %v1123_v14 = vpop.xlane.xlu1 %1122  ;;  %1198 = vadd.xlane.f32.xlu1 %v2403_v51 }
 0x1dc   : > { %1651 = vpow2.f32 %v994_v16  ;;  %v1148_v34 = vsub.f32 %v915_v25, %v1123_v14 }
 0x1de   : > { %v2408_v56 = vpop.eup %1647  ;;  %v1170_v15 = vmul.f32 1.442695, %v1148_v34 }
 0x1df   : > { %v949_v17 = vpop.xlane.xlu1 %948  ;;  %1024 = vadd.xlane.f32.xlu0 %v2408_v56 }
 0x1e0   : > { %1653 = vpow2.f32 %v1170_v15  ;;  %v973_v37 = vsub.f32 %v916_v63, %v949_v17 }
 0x1e2   : > { %v2415_v18 = vpop.eup %1649  ;;  %v996_v21 = vmul.f32 1.442695, %v973_v37 }
 0x1e3   : > { %v1125_v3 = vpop.xlane.xlu1 %1124  ;;  %1200 = vadd.xlane.f32.xlu0 %v2415_v18 }
 0x1e4   : > { %1655 = vpow2.f32 %v996_v21  ;;  %v1149_v42 = vsub.f32 %v917_v31, %v1125_v3 }
 0x1e6   : > { %v2422_v25 = vpop.eup %1651  ;;  %v1172_v24 = vmul.f32 1.442695, %v1149_v42 }
 0x1e7   : > { %v951_v20 = vpop.xlane.xlu1 %950  ;;  %1026 = vadd.xlane.f32.xlu1 %v2422_v25 }
 0x1e8   : > { %1657 = vpow2.f32 %v1172_v24  ;;  %v974_v45 = vsub.f32 %v918_v36, %v951_v20  ;;  %v2437_v36 = vpop.f32.mrb[4].mxu0 }
 0x1e9   : > { %v2441_v4 = vpop.f32.mrb[5].mxu0 }
 0x1ea   : > { %v2427_v63 = vpop.eup %1653  ;;  %v998_v7 = vmul.f32 1.442695, %v974_v45  ;;  %v2461_v17 = vpop.f32.mrb[6].mxu0 }
 0x1eb   : > { %v1127_v27 = vpop.xlane.xlu1 %1126  ;;  %1202 = vadd.xlane.f32.xlu1 %v2427_v63  ;;  %v2465_v3 = vpop.f32.mrb[7].mxu0 }
 0x1ec   : > { %1659 = vpow2.f32 %v998_v7  ;;  %v1150_v47 = vsub.f32 %v919_v43, %v1127_v27 }
 0x1ee   : > { %v2432_v31 = vpop.eup %1655  ;;  %v1174_v12 = vmul.f32 1.442695, %v1150_v47 }
 0x1ef   : > { %v953_v23 = vpop.xlane.xlu1 %952  ;;  %1028 = vadd.xlane.f32.xlu0 %v2432_v31 }
 0x1f0   : > { %1661 = vpow2.f32 %v1174_v12  ;;  %v975_v48 = vsub.f32 %v920_v46, %v953_v23 }
 0x1f2   : > { %v2439_v28 = vpop.eup %1657  ;;  %v1000_v26 = vmul.f32 1.442695, %v975_v48  ;;  %v1137_v48 = vpop.xlane.xlu0 %1136 }
 0x1f3   : > { %v1129_v30 = vpop.xlane.xlu1 %1128  ;;  %1204 = vadd.xlane.f32.xlu0 %v2439_v28 }
 0x1f4   : > { %1663 = vpow2.f32 %v1000_v26  ;;  %v1151_v50 = vsub.f32 %v921_v10, %v1129_v30 }
 0x1f6   : > { %v2446_v43 = vpop.eup %1659  ;;  %v1176_v1 = vmul.f32 1.442695, %v1151_v50 }
 0x1f7   : > { %v955_v8 = vpop.xlane.xlu1 %954  ;;  %1030 = vadd.xlane.f32.xlu1 %v2446_v43 }
 0x1f8   : > { %1665 = vpow2.f32 %v1176_v1  ;;  %v976_v52 = vsub.f32 %v922_v13, %v955_v8  ;;  %v2730_v1 = vmax.f32 %v2283_v0, 0.0  ;;  %v1141_v0 = vpop.xlane.xlu0 %1140 }
 0x1fa   : > { %v2451_v46 = vpop.eup %1661  ;;  %v1002_v33 = vmul.f32 1.442695, %v976_v52  ;;  %v1155_v8 = vsub.f32 %v2730_v1, %v1137_v48 }
 0x1fb   : > { %v1131_v16 = vpop.xlane.xlu1 %1130  ;;  %1206 = vadd.xlane.f32.xlu1 %v2451_v46 }
 0x1fc   : > { %1667 = vpow2.f32 %v1002_v33  ;;  %v1152_v10 = vsub.f32 %v2725_v54, %v1131_v16  ;;  %v2487_v16 = vpop.f32.mrb[8].mxu0 }
 0x1fd   : > { %v2491_v62 = vpop.f32.mrb[9].mxu0 }
 0x1fe   : > { %v2456_v14 = vpop.eup %1663  ;;  %v1178_v34 = vmul.f32 1.442695, %v1152_v10 }
 0x1ff   : > { %v957_v15 = vpop.xlane.xlu1 %956  ;;  %1032 = vadd.xlane.f32.xlu0 %v2456_v14 }
 0x200   : > { %1669 = vpow2.f32 %v1178_v34  ;;  %v977_v13 = vsub.f32 %v2726_v55, %v957_v15  ;;  %v1184_v34 = vmul.f32 1.442695, %v1155_v8  ;;  %v2732_v55 = vmax.f32 %v2290_v2, 0.0 }
 0x202   : > { %v2463_v37 = vpop.eup %1665  ;;  %v1004_v21 = vmul.f32 1.442695, %v977_v13 }
 0x203   : > { %v1133_v42 = vpop.xlane.xlu1 %1132  ;;  %1208 = vadd.xlane.f32.xlu0 %v2463_v37 }
 0x204   : > { %1671 = vpow2.f32 %v1004_v21  ;;  %v1153_v24 = vsub.f32 %v2727_v57, %v1133_v42  ;;  %v2733_v42 = vmax.f32 %v2300_v40, 0.0 }
 0x206   : > { %v2470_v20 = vpop.eup %1667  ;;  %v1180_v45 = vmul.f32 1.442695, %v1153_v24  ;;  %v1157_v57 = vsub.f32 %v2733_v42, %v1141_v0  ;;  %v306_v42 = vld [vmem:[%s2707_s2] sm:$0xff] }
 0x207   : > { %v959_v7 = vpop.xlane.xlu1 %958  ;;  %1034 = vadd.xlane.f32.xlu1 %v2470_v20 }
 0x208   : > { %1673 = vpow2.f32 %v1180_v45  ;;  %v978_v27 = vsub.f32 %v2728_v60, %v959_v7  ;;  %v2734_v45 = vmax.f32 %v2298_v39, 0.0 }
 0x20a   : > { %v2475_v47 = vpop.eup %1669  ;;  %v1006_v12 = vmul.f32 1.442695, %v978_v27 }
 0x20b   : > { %v1135_v23 = vpop.xlane.xlu1 %1134  ;;  %1210 = vadd.xlane.f32.xlu1 %v2475_v47 }
 0x20c   : > { %1675 = vpow2.f32 %v1006_v12  ;;  %v1154_v26 = vsub.f32 %v2729_v53, %v1135_v23  ;;  %v1188_v12 = vmul.f32 1.442695, %v1157_v57  ;;  %v2735_v23 = vmax.f32 %v2293_v35, 0.0 }
 0x20e   : > { %v2480_v30 = vpop.eup %1671  ;;  %v1182_v50 = vmul.f32 1.442695, %v1154_v26  ;;  %v2513_v26 = vpop.f32.mrb[10].mxu0 }
 0x20f   : > { %v961_v52 = vpop.xlane.xlu1 %960  ;;  %1036 = vadd.xlane.f32.xlu0 %v2480_v30  ;;  %v2517_v1 = vpop.f32.mrb[11].mxu0 }
 0x210   : > { %1677 = vpow2.f32 %v1182_v50  ;;  %v979_v33 = vsub.f32 %v2731_v61, %v961_v52  ;;  %v2530_v61 = vpop.f32.mrb[12].mxu0 }
 0x212   : > { %v2489_v54 = vpop.eup %1673  ;;  %v1008_v10 = vmul.f32 1.442695, %v979_v33  ;;  %v2532_v33 = vpop.f32.mrb[13].mxu0 }
 0x213   : > { %v963_v15 = vpop.xlane.xlu1 %962  ;;  %1212 = vadd.xlane.f32.xlu0 %v2489_v54 }
 0x214   : > { %1679 = vpow2.f32 %v1008_v10  ;;  %v980_v13 = vsub.f32 %v2732_v55, %v963_v15  ;;  %v2534_v10 = vpop.f32.mrb[14].mxu0 }
 0x215   : > { %1681 = vpow2.f32 %v1184_v34  ;;  %v2536_v34 = vpop.f32.mrb[15].mxu0 }
 0x216   : > { %v2496_v21 = vpop.eup %1675  ;;  %v1010_v58 = vmul.f32 1.442695, %v980_v13 }
 0x217   : > { %1038 = vadd.xlane.f32.xlu1 %v2496_v21  ;;  %v965_v24 = vpop.xlane.xlu1 %964 }
 0x218   : > { %1683 = vpow2.f32 %v1010_v58  ;;  %v981_v7 = vsub.f32 %v2734_v45, %v965_v24  ;;  %v664_v45 = vmul.f32 %v2398_v41, %v306_v42 }
 0x21a   : > { %v2503_v60 = vpop.eup %1677  ;;  %v1012_v27 = vmul.f32 1.442695, %v981_v7 }
 0x21b   : > { %1214 = vadd.xlane.f32.xlu1 %v2503_v60  ;;  %v1139_v2 = vpop.xlane.xlu1 %1138 }
 0x21c   : > { %1685 = vpow2.f32 %v1012_v27  ;;  %v1156_v48 = vsub.f32 %v2735_v23, %v1139_v2 }
 0x21d   : > { %1687 = vpow2.f32 %v1188_v12  ;;  %v307_v12 = vld [vmem:[%s2707_s2 + $0x8] sm:$0xff] }
 0x21e   : > { %v2508_v40 = vpop.eup %1679  ;;  %v1186_v53 = vmul.f32 1.442695, %v1156_v48 }
 0x21f   : > { %1040 = vadd.xlane.f32.xlu0 %v2508_v40  ;;  %v2511_v39 = vpop.eup %1681 }
 0x220   : > { %1689 = vpow2.f32 %v1186_v53 }
 0x222   : > { %v2515_v50 = vpop.eup %1683 }
 0x223   : > { %1042 = vadd.xlane.f32.xlu1 %v2515_v50  ;;  %1216 = vadd.xlane.f32.xlu0 %v2511_v39 }
 0x226   : > { %v2521_v35 = vpop.eup %1685 }
 0x227   : > { %1044 = vadd.xlane.f32.xlu0 %v2521_v35  ;;  %v2524_v8 = vpop.eup %1687 }
 0x22a   : > { %v2526_v52 = vpop.eup %1689 }
 0x22b   : > { %1218 = vadd.xlane.f32.xlu1 %v2526_v52  ;;  %1220 = vadd.xlane.f32.xlu0 %v2524_v8 }
 0x248   : > { %v1015_v15 = vpop.xlane.xlu1 %1014 }
 0x249   : > { %1691 = vrcp.f32 %v1015_v15 }
 0x24c   : > { %v1191_v0 = vpop.xlane.xlu1 %1190  ;;  %v1017_v55 = vpop.xlane.xlu0 %1016 }
 0x24d   : > { %1693 = vrcp.f32 %v1191_v0  ;;  %v665_v0 = vmul.f32 %v2394_v49, %v307_v12  ;;  %v308_v49 = vld [vmem:[%s2707_s2 + $0x10] sm:$0xff] }
 0x24e   : > { %1695 = vrcp.f32 %v1017_v55 }
 0x250   : > { %v1193_v13 = vpop.xlane.xlu0 %1192 }
 0x251   : > { %1697 = vrcp.f32 %v1193_v13 }
 0x253   : > { %v1692_v58 = vpop.eup %1691 }
 0x254   : > { %v1062_v57 = vmul.f32 0.2, %v1692_v58  ;;  %v1019_v24 = vpop.xlane.xlu1 %1018 }
 0x255   : > { %1699 = vrcp.f32 %v1019_v24 }
 0x256   : > { %v1078_v7 = vmul.f32 %v2356_v6, %v1062_v57 }
 0x257   : > { %v1694_v27 = vpop.eup %1693 }
 0x258   : > { %v1696_v2 = vpop.eup %1695  ;;  %v1238_v23 = vmul.f32 0.2, %v1694_v27  ;;  %v1195_v48 = vpop.xlane.xlu1 %1194  ;;  %v1094_v55 = vadd.f32 %v1078_v7, %v664_v45  ;;  %v666_v27 = vmul.f32 %v2417_v19, %v308_v49 }
 0x259   : > { %v1063_v53 = vmul.f32 0.2, %v1696_v2  ;;  %1701 = vrcp.f32 %v1195_v48 }
 0x25a   : > { %v1254_v15 = vmul.f32 %v2361_v9, %v1238_v23 }
 0x25b   : > { %v1698_v13 = vpop.eup %1697  ;;  %v1079_v41 = vmul.f32 %v2363_v11, %v1063_v53 }
 0x25c   : > { %v1239_v6 = vmul.f32 0.2, %v1698_v13  ;;  %v1270_v58 = vadd.f32 %v1254_v15, %v1094_v55  ;;  %v1021_v42 = vpop.xlane.xlu0 %1020 }
 0x25d   : > { %1703 = vrcp.f32 %v1021_v42  ;;  %v1095_v24 = vadd.f32 %v1079_v41, %v665_v0  ;;  %v309_v0 = vld [vmem:[%s2707_s2 + $0x18] sm:$0xff] }
 0x25e   : > { %v1255_v57 = vmul.f32 %v2369_v22, %v1239_v6  ;;  %1286 = vst [vmem:[%s2552_s8] sm:$0xff] %v1270_v58  ;;  %v667_v19 = vmul.f32 %v2413_v59, %v309_v0 }
 0x25f   : > { %v1700_v9 = vpop.eup %1699 }
 0x260   : > { %v1271_v45 = vadd.f32 %v1255_v57, %v1095_v24  ;;  %v1064_v11 = vmul.f32 0.2, %v1700_v9  ;;  %v1197_v7 = vpop.xlane.xlu0 %1196  ;;  %v310_v9 = vld [vmem:[%s2707_s2 + $0x20] sm:$0xff] }
 0x261   : > { %1705 = vrcp.f32 %v1197_v7 }
 0x262   : > { %1287 = vst [vmem:[%s2552_s8 + $0x8] sm:$0xff] %v1271_v45  ;;  %v1080_v22 = vmul.f32 %v2374_v29, %v1064_v11 }
 0x263   : > { %v1702_v12 = vpop.eup %1701 }
 0x264   : > { %v1240_v2 = vmul.f32 0.2, %v1702_v12  ;;  %v1023_v23 = vpop.xlane.xlu1 %1022  ;;  %v1096_v53 = vadd.f32 %v1080_v22, %v666_v27 }
 0x265   : > { %1707 = vrcp.f32 %v1023_v23  ;;  %v311_v23 = vld [vmem:[%s2707_s2 + $0x28] sm:$0xff] }
 0x266   : > { %v1256_v48 = vmul.f32 %v2379_v32, %v1240_v2 }
 0x267   : > { %v1704_v15 = vpop.eup %1703 }
 0x268   : > { %v1065_v55 = vmul.f32 0.2, %v1704_v15  ;;  %v1272_v13 = vadd.f32 %v1256_v48, %v1096_v53  ;;  %v1199_v41 = vpop.xlane.xlu1 %1198 }
 0x269   : > { %1709 = vrcp.f32 %v1199_v41 }
 0x26a   : > { %v1081_v29 = vmul.f32 %v2384_v38, %v1065_v55  ;;  %1288 = vst [vmem:[%s2552_s8 + $0x10] sm:$0xff] %v1272_v13  ;;  %v668_v38 = vmul.f32 %v2441_v4, %v310_v9  ;;  %v669_v4 = vmul.f32 %v2437_v36, %v311_v23 }
 0x26b   : > { %v1706_v6 = vpop.eup %1705 }
 0x26c   : > { %v1241_v58 = vmul.f32 0.2, %v1706_v6  ;;  %v1025_v42 = vpop.xlane.xlu0 %1024  ;;  %v1097_v32 = vadd.f32 %v1081_v29, %v667_v19  ;;  %v312_v29 = vld [vmem:[%s2707_s2 + $0x30] sm:$0xff] }
 0x26d   : > { %1711 = vrcp.f32 %v1025_v42 }
 0x26e   : > { %v1257_v57 = vmul.f32 %v2389_v44, %v1241_v58 }
 0x26f   : > { %v1708_v24 = vpop.eup %1707 }
 0x270   : > { %v1273_v49 = vadd.f32 %v1257_v57, %v1097_v32  ;;  %v1066_v45 = vmul.f32 0.2, %v1708_v24  ;;  %v1201_v11 = vpop.xlane.xlu0 %1200 }
 0x271   : > { %1713 = vrcp.f32 %v1201_v11 }
 0x272   : > { %1289 = vst [vmem:[%s2552_s8 + $0x18] sm:$0xff] %v1273_v49  ;;  %v1082_v59 = vmul.f32 %v2396_v5, %v1066_v45  ;;  %v313_v45 = vld [vmem:[%s2707_s2 + $0x38] sm:$0xff] }
 0x273   : > { %v1710_v7 = vpop.eup %1709 }
 0x274   : > { %v1242_v27 = vmul.f32 0.2, %v1710_v7  ;;  %v1027_v22 = vpop.xlane.xlu1 %1026  ;;  %v1098_v12 = vadd.f32 %v1082_v59, %v668_v38 }
 0x275   : > { %1715 = vrcp.f32 %v1027_v22 }
 0x276   : > { %v1258_v44 = vmul.f32 %v2403_v51, %v1242_v27 }
 0x277   : > { %v1712_v2 = vpop.eup %1711 }
 0x278   : > { %v1067_v48 = vmul.f32 0.2, %v1712_v2  ;;  %v1274_v53 = vadd.f32 %v1258_v44, %v1098_v12  ;;  %v1203_v15 = vpop.xlane.xlu1 %1202  ;;  %v314_v2 = vld [vmem:[%s2707_s2 + $0x40] sm:$0xff] }
 0x279   : > { %1717 = vrcp.f32 %v1203_v15 }
 0x27a   : > { %v1083_v5 = vmul.f32 %v2408_v56, %v1067_v48  ;;  %1290 = vst [vmem:[%s2552_s8 + $0x20] sm:$0xff] %v1274_v53  ;;  %v670_v56 = vmul.f32 %v2465_v3, %v312_v29  ;;  %v671_v3 = vmul.f32 %v2461_v17, %v313_v45 }
 0x27b   : > { %v1714_v0 = vpop.eup %1713 }
 0x27c   : > { %v1243_v55 = vmul.f32 0.2, %v1714_v0  ;;  %v1029_v13 = vpop.xlane.xlu0 %1028  ;;  %v1099_v51 = vadd.f32 %v1083_v5, %v669_v4 }
 0x27d   : > { %1719 = vrcp.f32 %v1029_v13  ;;  %v315_v13 = vld [vmem:[%s2707_s2 + $0x48] sm:$0xff] }
 0x27e   : > { %v1259_v41 = vmul.f32 %v2415_v18, %v1243_v55 }
 0x27f   : > { %v1716_v19 = vpop.eup %1715 }
 0x280   : > { %v1275_v6 = vadd.f32 %v1259_v41, %v1099_v51  ;;  %v1068_v58 = vmul.f32 0.2, %v1716_v19  ;;  %v1205_v42 = vpop.xlane.xlu0 %1204 }
 0x281   : > { %1721 = vrcp.f32 %v1205_v42 }
 0x282   : > { %1291 = vst [vmem:[%s2552_s8 + $0x28] sm:$0xff] %v1275_v6  ;;  %v1084_v36 = vmul.f32 %v2422_v25, %v1068_v58 }
 0x283   : > { %v1718_v32 = vpop.eup %1717 }
 0x284   : > { %v1244_v57 = vmul.f32 0.2, %v1718_v32  ;;  %v1031_v24 = vpop.xlane.xlu1 %1030  ;;  %v1100_v9 = vadd.f32 %v1084_v36, %v670_v56  ;;  %v316_v36 = vld [vmem:[%s2707_s2 + $0x50] sm:$0xff] }
 0x285   : > { %1723 = vrcp.f32 %v1031_v24 }
 0x286   : > { %v1260_v18 = vmul.f32 %v2427_v63, %v1244_v57 }
 0x287   : > { %v1720_v49 = vpop.eup %1719 }
 0x288   : > { %v1069_v11 = vmul.f32 0.2, %v1720_v49  ;;  %v1276_v38 = vadd.f32 %v1260_v18, %v1100_v9  ;;  %v1207_v59 = vpop.xlane.xlu1 %1206 }
 0x289   : > { %1725 = vrcp.f32 %v1207_v59 }
 0x28a   : > { %v1085_v25 = vmul.f32 %v2432_v31, %v1069_v11  ;;  %1292 = vst [vmem:[%s2552_s8 + $0x30] sm:$0xff] %v1276_v38  ;;  %v672_v31 = vmul.f32 %v2491_v62, %v314_v2  ;;  %v673_v62 = vmul.f32 %v2487_v16, %v315_v13 }
 0x28b   : > { %v1722_v7 = vpop.eup %1721 }
 0x28c   : > { %v1245_v27 = vmul.f32 0.2, %v1722_v7  ;;  %v1033_v22 = vpop.xlane.xlu0 %1032  ;;  %v1101_v63 = vadd.f32 %v1085_v25, %v671_v3  ;;  %v317_v25 = vld [vmem:[%s2707_s2 + $0x58] sm:$0xff] }
 0x28d   : > { %1727 = vrcp.f32 %v1033_v22  ;;  %v675_v7 = vmul.f32 %v2513_v26, %v317_v25 }
 0x28e   : > { %v1261_v44 = vmul.f32 %v2439_v28, %v1245_v27 }
 0x28f   : > { %v1724_v12 = vpop.eup %1723 }
 0x290   : > { %v1277_v23 = vadd.f32 %v1261_v44, %v1101_v63  ;;  %v1070_v48 = vmul.f32 0.2, %v1724_v12  ;;  %v1209_v53 = vpop.xlane.xlu0 %1208 }
 0x291   : > { %1729 = vrcp.f32 %v1209_v53 }
 0x292   : > { %1293 = vst [vmem:[%s2552_s8 + $0x38] sm:$0xff] %v1277_v23  ;;  %v1086_v17 = vmul.f32 %v2446_v43, %v1070_v48 }
 0x293   : > { %v1726_v15 = vpop.eup %1725 }
 0x294   : > { %v1246_v4 = vmul.f32 0.2, %v1726_v15  ;;  %v1035_v5 = vpop.xlane.xlu1 %1034  ;;  %v1102_v0 = vadd.f32 %v1086_v17, %v672_v31 }
 0x295   : > { %1731 = vrcp.f32 %v1035_v5 }
 0x296   : > { %v1262_v28 = vmul.f32 %v2451_v46, %v1246_v4 }
 0x297   : > { %v1728_v55 = vpop.eup %1727 }
 0x298   : > { %v1071_v51 = vmul.f32 0.2, %v1728_v55  ;;  %v1278_v41 = vadd.f32 %v1262_v28, %v1102_v0  ;;  %v1211_v19 = vpop.xlane.xlu1 %1210 }
 0x299   : > { %1733 = vrcp.f32 %v1211_v19 }
 0x29a   : > { %v1087_v43 = vmul.f32 %v2456_v14, %v1071_v51  ;;  %1294 = vst [vmem:[%s2552_s8 + $0x40] sm:$0xff] %v1278_v41  ;;  %v674_v14 = vmul.f32 %v2517_v1, %v316_v36 }
 0x29b   : > { %v1730_v29 = vpop.eup %1729 }
 0x29c   : > { %v1247_v6 = vmul.f32 0.2, %v1730_v29  ;;  %v1037_v58 = vpop.xlane.xlu0 %1036  ;;  %v1103_v46 = vadd.f32 %v1087_v43, %v673_v62 }
 0x29d   : > { %1735 = vrcp.f32 %v1037_v58 }
 0x29e   : > { %v1263_v42 = vmul.f32 %v2463_v37, %v1247_v6 }
 0x29f   : > { %v1732_v56 = vpop.eup %1731 }
 0x2a0   : > { %v1279_v32 = vadd.f32 %v1263_v42, %v1103_v46  ;;  %v1072_v57 = vmul.f32 0.2, %v1732_v56  ;;  %v1213_v24 = vpop.xlane.xlu0 %1212  ;;  %v320_v42 = vld [vmem:[%s2707_s2 + $0x70] sm:$0xff] }
 0x2a1   : > { %1737 = vrcp.f32 %v1213_v24 }
 0x2a2   : > { %1295 = vst [vmem:[%s2552_s8 + $0x48] sm:$0xff] %v1279_v32  ;;  %v1088_v16 = vmul.f32 %v2470_v20, %v1072_v57 }
 0x2a3   : > { %v1734_v18 = vpop.eup %1733 }
 0x2a4   : > { %v1248_v9 = vmul.f32 0.2, %v1734_v18  ;;  %v1039_v49 = vpop.xlane.xlu1 %1038  ;;  %v1104_v45 = vadd.f32 %v1088_v16, %v674_v14 }
 0x2a5   : > { %1739 = vrcp.f32 %v1039_v49 }
 0x2a6   : > { %v1264_v37 = vmul.f32 %v2475_v47, %v1248_v9 }
 0x2a7   : > { %v1736_v11 = vpop.eup %1735 }
 0x2a8   : > { %v1073_v38 = vmul.f32 0.2, %v1736_v11  ;;  %v1280_v59 = vadd.f32 %v1264_v37, %v1104_v45  ;;  %v1215_v3 = vpop.xlane.xlu1 %1214 }
 0x2a9   : > { %1741 = vrcp.f32 %v1215_v3 }
 0x2aa   : > { %v1089_v1 = vmul.f32 %v2480_v30, %v1073_v38  ;;  %1296 = vst [vmem:[%s2552_s8 + $0x50] sm:$0xff] %v1280_v59  ;;  %v318_v30 = vld [vmem:[%s2707_s2 + $0x60] sm:$0xff] }
 0x2ab   : > { %v1738_v20 = vpop.eup %1737  ;;  %v676_v17 = vmul.f32 %v2532_v33, %v318_v30 }
 0x2ac   : > { %v1249_v27 = vmul.f32 0.2, %v1738_v20  ;;  %v1041_v22 = vpop.xlane.xlu0 %1040  ;;  %v1105_v47 = vadd.f32 %v1089_v1, %v675_v7 }
 0x2ad   : > { %1743 = vrcp.f32 %v1041_v22 }
 0x2ae   : > { %v1265_v63 = vmul.f32 %v2489_v54, %v1249_v27 }
 0x2af   : > { %v1740_v44 = vpop.eup %1739 }
 0x2b0   : > { %v1281_v12 = vadd.f32 %v1265_v63, %v1105_v47  ;;  %v1074_v2 = vmul.f32 0.2, %v1740_v44  ;;  %v1043_v23 = vpop.xlane.xlu1 %1042  ;;  %v1217_v48 = vpop.xlane.xlu0 %1216 }
 0x2b1   : > { %1745 = vrcp.f32 %v1043_v23 }
 0x2b2   : > { %1297 = vst [vmem:[%s2552_s8 + $0x58] sm:$0xff] %v1281_v12  ;;  %v1090_v53 = vmul.f32 %v2496_v21, %v1074_v2  ;;  %1747 = vrcp.f32 %v1217_v48  ;;  %v319_v21 = vld [vmem:[%s2707_s2 + $0x68] sm:$0xff] }
 0x2b3   : > { %v1742_v26 = vpop.eup %1741 }
 0x2b4   : > { %v1250_v31 = vmul.f32 0.2, %v1742_v26  ;;  %v1045_v54 = vpop.xlane.xlu0 %1044  ;;  %v1106_v4 = vadd.f32 %v1090_v53, %v676_v17 }
 0x2b5   : > { %1749 = vrcp.f32 %v1045_v54 }
 0x2b6   : > { %v1266_v15 = vmul.f32 %v2503_v60, %v1250_v31  ;;  %v677_v60 = vmul.f32 %v2530_v61, %v319_v21 }
 0x2b7   : > { %v1744_v5 = vpop.eup %1743 }
 0x2b8   : > { %v1282_v28 = vadd.f32 %v1266_v15, %v1106_v4  ;;  %v1075_v0 = vmul.f32 0.2, %v1744_v5  ;;  %v1219_v55 = vpop.xlane.xlu1 %1218  ;;  %v1221_v13 = vpop.xlane.xlu0 %1220 }
 0x2b9   : > { %1751 = vrcp.f32 %v1219_v55 }
 0x2ba   : > { %1298 = vst [vmem:[%s2552_s8 + $0x60] sm:$0xff] %v1282_v28  ;;  %1753 = vrcp.f32 %v1221_v13  ;;  %v1091_v33 = vmul.f32 %v2508_v40, %v1075_v0  ;;  %v321_v40 = vld [vmem:[%s2707_s2 + $0x78] sm:$0xff] }
 0x2bb   : > { %v1746_v51 = vpop.eup %1745  ;;  %v679_v24 = vmul.f32 %v2534_v10, %v321_v40 }
 0x2bc   : > { %v1748_v41 = vpop.eup %1747  ;;  %v1076_v62 = vmul.f32 0.2, %v1746_v51  ;;  %v1107_v29 = vadd.f32 %v1091_v33, %v677_v60 }
 0x2bd   : > { %v1251_v19 = vmul.f32 0.2, %v1748_v41 }
 0x2be   : > { %v1092_v61 = vmul.f32 %v2515_v50, %v1076_v62 }
 0x2bf   : > { %v1750_v43 = vpop.eup %1749  ;;  %v1267_v6 = vmul.f32 %v2511_v39, %v1251_v19  ;;  %v678_v39 = vmul.f32 %v2536_v34, %v320_v42 }
 0x2c0   : > { %v1077_v58 = vmul.f32 0.2, %v1750_v43 }
 0x2c1   : > { %v1283_v46 = vadd.f32 %v1267_v6, %v1107_v29  ;;  %v1108_v16 = vadd.f32 %v1092_v61, %v678_v39 }
 0x2c2   : > { %v1093_v36 = vmul.f32 %v2521_v35, %v1077_v58 }
 0x2c3   : > { %v1752_v56 = vpop.eup %1751  ;;  %1299 = vst [vmem:[%s2552_s8 + $0x68] sm:$0xff] %v1283_v46 }
 0x2c4   : > { %v1754_v32 = vpop.eup %1753  ;;  %v1252_v57 = vmul.f32 0.2, %v1752_v56  ;;  %v1109_v18 = vadd.f32 %v1093_v36, %v679_v24 }
 0x2c5   : > { %v1253_v14 = vmul.f32 0.2, %v1754_v32 }
 0x2c6   : > { %v1268_v50 = vmul.f32 %v2526_v52, %v1252_v57 }
 0x2c7   : > { %v1269_v9 = vmul.f32 %v2524_v8, %v1253_v14 }
 0x2c8   : > { %v1284_v35 = vadd.f32 %v1268_v50, %v1108_v16 }
 0x2c9   : > { %v1285_v10 = vadd.f32 %v1269_v9, %v1109_v18 }
 0x2ca   : > { %1300 = vst [vmem:[%s2552_s8 + $0x70] sm:$0xff] %v1284_v35 }
 0x2cb   : > { %1301 = vst [vmem:[%s2552_s8 + $0x78] sm:$0xff] %v1285_v10 }
 0x2cc   : > { %1768 = shalt.err (!%p1765_p7)
}
 0x2cd   : > { %s1769_s8 = scalar_lea.hbm %s2657_s29, 2048  ;;  %s1773_s22 = scalar_lea.hbm %s2709_s4, 4096 }
 0x2ce   : > { %p1770_p8 = scmp.ne.s32.totalorder %s2657_s29, %s1769_s8  ;;  %p1774_p0 = scmp.lt.u32.totalorder %s2657_s29, %s2709_s4 }
 0x2cf   : > { %p1775_p1 = scmp.lt.u32.totalorder %s1773_s22, %s1769_s8  ;;  %p1777_p3 = scmp.lt.u32.totalorder %s1769_s8, %s2657_s29 }
 0x2d0   : > { %p1771_p12 = pnand %p1770_p8, %p1906_p9 }
 0x2d1   : > { %p1776_p2 = por %p1775_p1, %p1774_p0 }
 0x2d2   : > { %p1772_p13 = pneg %p1771_p12 }
 0x2d3   : > { %p1778_p4 = por %p1777_p3, %p1776_p2 }
 0x2d5   : > { %p1779_p5 = pnand %p1778_p4, %p1772_p13 }
 0x2d7   : > { %1782 = shalt.err (!%p1779_p5)
}
 0x2d8   : > { %s1831_s5 = smov 128   ;;  %s1832_s6 = smov 8  }
 0x2d9   : > { %1579 = dma.vmem_to_hbm [thread:$0]  (%p1906_p9), %s2659_s7, 2048, %s2657_s29, %s1303_s19, %s1831_s5, %s1831_s5, %s1832_s6  }
 0x2da PF: > { %s1331_s11 = sand.u32 1, %s1809_s15   ;;  %p1582_p6 = pnand %p1409_p11, %p1910_p10 }
 0x2db   : > { %s1332_s13 = scalar_lea.sflag [#allocation4], %s1331_s11 }
 0x2dc   : > { %1804 = dma.done.wait (!%p1582_p6), %s1332_s13, 2048  }
 0x2dd   : > { %1806 = vsyncadd (!%p1582_p6), %s1332_s13, 4294965248  ;;  %p17_p7 = scmp.ge.s32.totalorder %s1883_s21, 4   ;;  %s2736_s15 = smov %s1813_s16 }
 0x2de   : > { %s2737_s16 = smov %s1817_s17  ;;  %s2738_s17 = smov %s1895_s24 }
 0x2df   : > { %s2739_s18 = smov %s1883_s21  ;;  %19 = sbr.rel (!%p17_p7) target bundleno = 5 (0x5), region = 135 }
 0x2e6   :  { %1337 = vsyncpa [#allocation3], 1 }
 0x2e7   :  { %1339 = vsyncpa [#allocation3 + $0x1], 1 }
 0x2e8   :  { %1340 = vsyncpa [#allocation4], 1 }
 0x2e9   :  { %1342 = vsyncpa [#allocation4 + $0x1], 1 }

</bundles_post_ra>
